<compile_context>
chip_gen: v5e
topology: v5e:2x2
jax: 0.10.0
libtpu: 0.0.40
codegen_flags: <defaults>
</compile_context>

<pallas_src>
import jax
import jax.numpy as jnp
import numpy as np
from jax import lax
from jax.experimental import pallas as pl
from jax.experimental.pallas import tpu as pltpu


# ----------------------------------------------------------------------------
# Pallas kernel: fused bidirectional LSTM recurrence (hidden projection only)
# ----------------------------------------------------------------------------
def bilstm_kernel(lens_ref, gates_ref, whh_f_ref, whh_b_ref,
                  outf_ref, outb_ref, hn_ref, cn_ref):
    # gates_ref : (T, B, 8H)  precomputed  x @ [W_ih_f^T | W_ih_b^T] + biases
    # lens_ref  : (B, 1)      int32 valid lengths (0 for padded batch rows)
    # whh_*_ref : (H, 4H)     recurrent weights (already transposed)
    T, B, H = outf_ref.shape
    G = 4 * H

    # Hoist loop-invariant loads (avoid re-emitting broadcasts/loads per step).
    lens = lens_ref[...]                       # (B, 1) int32
    whh_f = whh_f_ref[...]                     # (H, 4H)
    whh_b = whh_b_ref[...]                     # (H, 4H)

    def half_cell(g_pre, h, c, whh):
        gates = g_pre + jnp.dot(h, whh, preferred_element_type=jnp.float32)
        i_g = jax.nn.sigmoid(gates[:, 0:H])
        f_g = jax.nn.sigmoid(gates[:, H:2 * H])
        g_g = jnp.tanh(gates[:, 2 * H:3 * H])
        o_g = jax.nn.sigmoid(gates[:, 3 * H:4 * H])
        c_new = f_g * c + i_g * g_g
        h_new = o_g * jnp.tanh(c_new)
        return h_new, c_new

    def body(s, carry):
        h_f, c_f, h_b, c_b = carry

        # ---------------- forward direction, time t_f = s ----------------
        t_f = s
        g_f = gates_ref[t_f][:, 0:G]           # (B, 4H)
        hf_new, cf_new = half_cell(g_f, h_f, c_f, whh_f)
        m_f = t_f < lens                       # (B, 1) bool
        h_f = jnp.where(m_f, hf_new, h_f)      # carry old state past seq end
        c_f = jnp.where(m_f, cf_new, c_f)
        outf_ref[t_f] = jnp.where(m_f, hf_new, 0.0)   # zeros at padding

        # --------------- backward direction, time t_b = T-1-s -------------
        t_b = T - 1 - s
        g_b = gates_ref[t_b][:, G:2 * G]       # (B, 4H)
        hb_new, cb_new = half_cell(g_b, h_b, c_b, whh_b)
        m_b = t_b < lens
        h_b = jnp.where(m_b, hb_new, h_b)
        c_b = jnp.where(m_b, cb_new, c_b)
        outb_ref[t_b] = jnp.where(m_b, hb_new, 0.0)

        return h_f, c_f, h_b, c_b

    zero = jnp.zeros((B, H), jnp.float32)
    h_f, c_f, h_b, c_b = lax.fori_loop(0, T, body, (zero, zero, zero, zero),
                                       unroll=True)

    hn_ref[0] = h_f
    hn_ref[1] = h_b
    cn_ref[0] = c_f
    cn_ref[1] = c_b


def _compiler_params():
    # Generation-aware VMEM limit; leave headroom (esp. on v7x's 64 MiB VMEM).
    try:
        cap = pltpu.get_tpu_info().vmem_capacity_bytes
        return pltpu.CompilerParams(vmem_limit_bytes=min(32 << 20, cap // 2))
    except Exception:
        return None  # fall back to compiler defaults


def bilstm_pallas(gates_in, lens, whh_f_t, whh_b_t):
    T, Bp, _ = gates_in.shape
    H = whh_f_t.shape[0]
    out_shapes = (
        jax.ShapeDtypeStruct((T, Bp, H), jnp.float32),   # forward outputs
        jax.ShapeDtypeStruct((T, Bp, H), jnp.float32),   # backward outputs
        jax.ShapeDtypeStruct((2, Bp, H), jnp.float32),   # h_n
        jax.ShapeDtypeStruct((2, Bp, H), jnp.float32),   # c_n
    )
    return pl.pallas_call(
        bilstm_kernel,
        out_shape=out_shapes,
        compiler_params=_compiler_params(),
    )(lens, gates_in, whh_f_t, whh_b_t)


# ----------------------------------------------------------------------------
# Encoder wrapper (embedding gather, hoisted input projection, assembly)
# ----------------------------------------------------------------------------
def init_encoder_params(key, input_dim, embed_dim, hidden_dim):
    ks = jax.random.split(key, 9)
    bound = 1.0 / np.sqrt(hidden_dim)
    u = lambda k, shape: jax.random.uniform(k, shape, jnp.float32, -bound, bound)
    params = {
        "embedding": jax.random.normal(ks[0], (input_dim, embed_dim), jnp.float32),
        # forward direction
        "wih_f": u(ks[1], (4 * hidden_dim, embed_dim)),
        "whh_f": u(ks[2], (4 * hidden_dim, hidden_dim)),
        "b_f": u(ks[3], (4 * hidden_dim,)) + u(ks[4], (4 * hidden_dim,)),  # b_ih+b_hh
        # backward direction
        "wih_b": u(ks[5], (4 * hidden_dim, embed_dim)),
        "whh_b": u(ks[6], (4 * hidden_dim, hidden_dim)),
        "b_b": u(ks[7], (4 * hidden_dim,)) + u(ks[8], (4 * hidden_dim,)),
    }
    return params


@jax.jit
def encoder_forward(params, x_ids, x_sz):
    # x_ids: (B, S) int32 token ids; x_sz: (B,) int32 valid lengths
    B, S = x_ids.shape
    E = params["embedding"].shape[1]
    H = params["whh_f"].shape[1]

    emb = params["embedding"][x_ids]                  # (B, S, E)
    emb_t = jnp.transpose(emb, (1, 0, 2))             # (S, B, E)  time-major

    # Hoisted input projection for both directions, bias folded in:
    # one big (S*B, E) x (E, 8H) matmul at full MXU occupancy.
    w_in = jnp.concatenate([params["wih_f"].T, params["wih_b"].T], axis=1)  # (E, 8H)
    b_in = jnp.concatenate([params["b_f"], params["b_b"]])[None, None, :]   # (1,1,8H)
    gates_in = (emb_t.reshape(S * B, E) @ w_in).reshape(S, B, 8 * H) + b_in

    # Pad batch to a multiple of 8 sublanes; padded rows get length 0.
    Bp = ((B + 7) // 8) * 8
    pad = Bp - B
    gates_in = jnp.pad(gates_in, ((0, 0), (0, pad), (0, 0)))
    lens = jnp.pad(x_sz.astype(jnp.int32), (0, pad))[:, None]               # (Bp, 1)

    out_f, out_b, h_n, c_n = bilstm_pallas(
        gates_in, lens, params["whh_f"].T, params["whh_b"].T)

    out_f = out_f[:, :B]
    out_b = out_b[:, :B]
    h_n = h_n[:, :B]
    c_n = c_n[:, :B]

    output = jnp.concatenate([out_f, out_b], axis=-1)  # (S, B, 2H)
    output = jnp.transpose(output, (1, 0, 2))          # (B, S, 2H)
    return output, (h_n, c_n)


# ----------------------------------------------------------------------------
# Pure-JAX reference (mirrors packed bidirectional LSTM semantics)
# ----------------------------------------------------------------------------
def encoder_reference(params, x_ids, x_sz):
    B, S = x_ids.shape
    H = params["whh_f"].shape[1]
    emb = params["embedding"][x_ids]
    emb_t = jnp.transpose(emb, (1, 0, 2))
    mask = (jnp.arange(S)[:, None] < x_sz[None, :]).astype(jnp.float32)[..., None]

    def run(wih, whh, b, order):
        h = jnp.zeros((B, H), jnp.float32)
        c = jnp.zeros((B, H), jnp.float32)
        outs = [None] * S
        for t in order:
            x_t, m = emb_t[t], mask[t]
            gates = x_t @ wih.T + h @ whh.T + b
            i_g = jax.nn.sigmoid(gates[:, :H])
            f_g = jax.nn.sigmoid(gates[:, H:2 * H])
            g_g = jnp.tanh(gates[:, 2 * H:3 * H])
            o_g = jax.nn.sigmoid(gates[:, 3 * H:])
            c_new = f_g * c + i_g * g_g
            h_new = o_g * jnp.tanh(c_new)
            h = m * h_new + (1 - m) * h
            c = m * c_new + (1 - m) * c
            outs[t] = m * h_new
        return jnp.stack(outs, 0), h, c

    of, hf, cf = run(params["wih_f"], params["whh_f"], params["b_f"], range(S))
    ob, hb, cb = run(params["wih_b"], params["whh_b"], params["b_b"],
                     range(S - 1, -1, -1))
    output = jnp.transpose(jnp.concatenate([of, ob], -1), (1, 0, 2))
    return output, (jnp.stack([hf, hb]), jnp.stack([cf, cb]))


# ----------------------------------------------------------------------------
if __name__ == "__main__":
    INPUT_DIM = 16    # vocab size
    EMBED_DIM = 32
    HIDDEN_DIM = 32
    BATCH = 2
    SEQ = 8

    key = jax.random.PRNGKey(0)
    pkey, xkey = jax.random.split(key)
    params = init_encoder_params(pkey, INPUT_DIM, EMBED_DIM, HIDDEN_DIM)

    x_ids = jax.random.randint(xkey, (BATCH, SEQ), 0, INPUT_DIM, dtype=jnp.int32)
    x_sz = jnp.array([SEQ, 5], dtype=jnp.int32)   # max length == SEQ

    output, (h_n, c_n) = encoder_forward(params, x_ids, x_sz)
    jax.block_until_ready((output, h_n, c_n))

    ref_out, (ref_h, ref_c) = encoder_reference(params, x_ids, x_sz)
    np.testing.assert_allclose(np.asarray(output), np.asarray(ref_out),
                               rtol=2e-3, atol=2e-3)
    np.testing.assert_allclose(np.asarray(h_n), np.asarray(ref_h),
                               rtol=2e-3, atol=2e-3)
    np.testing.assert_allclose(np.asarray(c_n), np.asarray(ref_c),
                               rtol=2e-3, atol=2e-3)

    assert output.shape == (BATCH, SEQ, 2 * HIDDEN_DIM)
    assert h_n.shape == (2, BATCH, HIDDEN_DIM) and c_n.shape == (2, BATCH, HIDDEN_DIM)
    print("KERNEL_OK")
</pallas_src>

<mosaic_0001>
module attributes {stable_mosaic.version = 11 : i64} {
  func.func @bilstm_kernel(%arg0: memref<8x1xi32, #tpu.memory_space<vmem>>, %arg1: memref<8x8x256xf32, #tpu.memory_space<vmem>>, %arg2: memref<32x128xf32, #tpu.memory_space<vmem>>, %arg3: memref<32x128xf32, #tpu.memory_space<vmem>>, %arg4: memref<8x8x32xf32, #tpu.memory_space<vmem>>, %arg5: memref<8x8x32xf32, #tpu.memory_space<vmem>>, %arg6: memref<2x8x32xf32, #tpu.memory_space<vmem>>, %arg7: memref<2x8x32xf32, #tpu.memory_space<vmem>>) attributes {dimension_semantics = [], scalar_prefetch = 0 : i64, scratch_operands = 0 : i64, tpu.core_type = #tpu.core_type<tc>} {
    %c0 = arith.constant 0 : index
    %c0_0 = arith.constant 0 : index
    %0 = vector.load %arg0[%c0, %c0_0] : memref<8x1xi32, #tpu.memory_space<vmem>>, vector<8x1xi32>
    %c0_1 = arith.constant 0 : index
    %c0_2 = arith.constant 0 : index
    %1 = vector.load %arg2[%c0_1, %c0_2] : memref<32x128xf32, #tpu.memory_space<vmem>>, vector<32x128xf32>
    %c0_3 = arith.constant 0 : index
    %c0_4 = arith.constant 0 : index
    %2 = vector.load %arg3[%c0_3, %c0_4] : memref<32x128xf32, #tpu.memory_space<vmem>>, vector<32x128xf32>
    %cst = arith.constant 0.000000e+00 : f32
    %3 = vector.broadcast %cst : f32 to vector<8x32xf32>
    %c0_i32 = arith.constant 0 : i32
    %4 = arith.index_cast %c0_i32 : i32 to index
    %c0_5 = arith.constant 0 : index
    %c0_6 = arith.constant 0 : index
    %5 = vector.load %arg1[%4, %c0_5, %c0_6] : memref<8x8x256xf32, #tpu.memory_space<vmem>>, vector<1x8x256xf32>
    %6 = vector.shape_cast %5 : vector<1x8x256xf32> to vector<8x256xf32>
    %7 = vector.extract_strided_slice %6 {offsets = [0, 0], sizes = [8, 128], strides = [1, 1]} : vector<8x256xf32> to vector<8x128xf32>
    %cst_7 = arith.constant dense<0.000000e+00> : vector<8x128xf32>
    %8 = tpu.matmul %3, %1, %cst_7 {dimension_numbers = #tpu.dot_dimension_numbers<[1], [0], [0], [1], [0, 0, 1, 1], [], []>} : vector<8x32xf32>, vector<32x128xf32>, vector<8x128xf32> -> vector<8x128xf32>
    %9 = arith.addf %7, %8 : vector<8x128xf32>
    %10 = vector.extract_strided_slice %9 {offsets = [0, 0], sizes = [8, 32], strides = [1, 1]} : vector<8x128xf32> to vector<8x32xf32>
    %11 = arith.negf %10 : vector<8x32xf32>
    %12 = math.exp %11 : vector<8x32xf32>
    %cst_8 = arith.constant 1.000000e+00 : f32
    %13 = vector.broadcast %cst_8 : f32 to vector<8x32xf32>
    %14 = arith.addf %13, %12 : vector<8x32xf32>
    %15 = arith.divf %13, %14 : vector<8x32xf32>
    %16 = vector.extract_strided_slice %9 {offsets = [0, 32], sizes = [8, 32], strides = [1, 1]} : vector<8x128xf32> to vector<8x32xf32>
    %17 = arith.negf %16 : vector<8x32xf32>
    %18 = math.exp %17 : vector<8x32xf32>
    %cst_9 = arith.constant 1.000000e+00 : f32
    %19 = vector.broadcast %cst_9 : f32 to vector<8x32xf32>
    %20 = arith.addf %19, %18 : vector<8x32xf32>
    %21 = arith.divf %19, %20 : vector<8x32xf32>
    %22 = vector.extract_strided_slice %9 {offsets = [0, 64], sizes = [8, 32], strides = [1, 1]} : vector<8x128xf32> to vector<8x32xf32>
    %23 = math.tanh %22 : vector<8x32xf32>
    %24 = vector.extract_strided_slice %9 {offsets = [0, 96], sizes = [8, 32], strides = [1, 1]} : vector<8x128xf32> to vector<8x32xf32>
    %25 = arith.negf %24 : vector<8x32xf32>
    %26 = math.exp %25 : vector<8x32xf32>
    %cst_10 = arith.constant 1.000000e+00 : f32
    %27 = vector.broadcast %cst_10 : f32 to vector<8x32xf32>
    %28 = arith.addf %27, %26 : vector<8x32xf32>
    %29 = arith.divf %27, %28 : vector<8x32xf32>
    %30 = arith.mulf %21, %3 : vector<8x32xf32>
    %31 = arith.mulf %15, %23 : vector<8x32xf32>
    %32 = arith.addf %30, %31 : vector<8x32xf32>
    %33 = math.tanh %32 : vector<8x32xf32>
    %34 = arith.mulf %29, %33 : vector<8x32xf32>
    %35 = vector.broadcast %c0_i32 : i32 to vector<8x1xi32>
    %36 = arith.cmpi slt, %35, %0 : vector<8x1xi32>
    %37 = vector.shape_cast %36 : vector<8x1xi1> to vector<8x1xi1>
    %38 = vector.broadcast %37 : vector<8x1xi1> to vector<8x32xi1>
    %39 = arith.select %38, %34, %3 : vector<8x32xi1>, vector<8x32xf32>
    %40 = vector.shape_cast %36 : vector<8x1xi1> to vector<8x1xi1>
    %41 = vector.broadcast %40 : vector<8x1xi1> to vector<8x32xi1>
    %42 = arith.select %41, %32, %3 : vector<8x32xi1>, vector<8x32xf32>
    %cst_11 = arith.constant 0.000000e+00 : f32
    %43 = vector.shape_cast %36 : vector<8x1xi1> to vector<8x1xi1>
    %44 = vector.broadcast %43 : vector<8x1xi1> to vector<8x32xi1>
    %45 = vector.broadcast %cst_11 : f32 to vector<8x32xf32>
    %46 = arith.select %44, %34, %45 : vector<8x32xi1>, vector<8x32xf32>
    %47 = arith.index_cast %c0_i32 : i32 to index
    %c0_12 = arith.constant 0 : index
    %c0_13 = arith.constant 0 : index
    %48 = vector.load %arg4[%47, %c0_12, %c0_13] : memref<8x8x32xf32, #tpu.memory_space<vmem>>, vector<1x8x32xf32>
    %49 = vector.shape_cast %48 : vector<1x8x32xf32> to vector<8x32xf32>
    %50 = vector.shape_cast %46 : vector<8x32xf32> to vector<1x8x32xf32>
    tpu.vector_store %arg4[%47, %c0_12, %c0_13], %50 {strides = array<i32>} : memref<8x8x32xf32, #tpu.memory_space<vmem>>, vector<1x8x32xf32>,
    %c7_i32 = arith.constant 7 : i32
    %51 = arith.subi %c7_i32, %c0_i32 : i32
    %52 = arith.index_cast %51 : i32 to index
    %c0_14 = arith.constant 0 : index
    %c0_15 = arith.constant 0 : index
    %53 = vector.load %arg1[%52, %c0_14, %c0_15] : memref<8x8x256xf32, #tpu.memory_space<vmem>>, vector<1x8x256xf32>
    %54 = vector.shape_cast %53 : vector<1x8x256xf32> to vector<8x256xf32>
    %55 = vector.extract_strided_slice %54 {offsets = [0, 128], sizes = [8, 128], strides = [1, 1]} : vector<8x256xf32> to vector<8x128xf32>
    %cst_16 = arith.constant dense<0.000000e+00> : vector<8x128xf32>
    %56 = tpu.matmul %3, %2, %cst_16 {dimension_numbers = #tpu.dot_dimension_numbers<[1], [0], [0], [1], [0, 0, 1, 1], [], []>} : vector<8x32xf32>, vector<32x128xf32>, vector<8x128xf32> -> vector<8x128xf32>
    %57 = arith.addf %55, %56 : vector<8x128xf32>
    %58 = vector.extract_strided_slice %57 {offsets = [0, 0], sizes = [8, 32], strides = [1, 1]} : vector<8x128xf32> to vector<8x32xf32>
    %59 = arith.negf %58 : vector<8x32xf32>
    %60 = math.exp %59 : vector<8x32xf32>
    %cst_17 = arith.constant 1.000000e+00 : f32
    %61 = vector.broadcast %cst_17 : f32 to vector<8x32xf32>
    %62 = arith.addf %61, %60 : vector<8x32xf32>
    %63 = arith.divf %61, %62 : vector<8x32xf32>
    %64 = vector.extract_strided_slice %57 {offsets = [0, 32], sizes = [8, 32], strides = [1, 1]} : vector<8x128xf32> to vector<8x32xf32>
    %65 = arith.negf %64 : vector<8x32xf32>
    %66 = math.exp %65 : vector<8x32xf32>
    %cst_18 = arith.constant 1.000000e+00 : f32
    %67 = vector.broadcast %cst_18 : f32 to vector<8x32xf32>
    %68 = arith.addf %67, %66 : vector<8x32xf32>
    %69 = arith.divf %67, %68 : vector<8x32xf32>
    %70 = vector.extract_strided_slice %57 {offsets = [0, 64], sizes = [8, 32], strides = [1, 1]} : vector<8x128xf32> to vector<8x32xf32>
    %71 = math.tanh %70 : vector<8x32xf32>
    %72 = vector.extract_strided_slice %57 {offsets = [0, 96], sizes = [8, 32], strides = [1, 1]} : vector<8x128xf32> to vector<8x32xf32>
    %73 = arith.negf %72 : vector<8x32xf32>
    %74 = math.exp %73 : vector<8x32xf32>
    %cst_19 = arith.constant 1.000000e+00 : f32
    %75 = vector.broadcast %cst_19 : f32 to vector<8x32xf32>
    %76 = arith.addf %75, %74 : vector<8x32xf32>
    %77 = arith.divf %75, %76 : vector<8x32xf32>
    %78 = arith.mulf %69, %3 : vector<8x32xf32>
    %79 = arith.mulf %63, %71 : vector<8x32xf32>
    %80 = arith.addf %78, %79 : vector<8x32xf32>
    %81 = math.tanh %80 : vector<8x32xf32>
    %82 = arith.mulf %77, %81 : vector<8x32xf32>
    %83 = vector.broadcast %51 : i32 to vector<8x1xi32>
    %84 = arith.cmpi slt, %83, %0 : vector<8x1xi32>
    %85 = vector.shape_cast %84 : vector<8x1xi1> to vector<8x1xi1>
    %86 = vector.broadcast %85 : vector<8x1xi1> to vector<8x32xi1>
    %87 = arith.select %86, %82, %3 : vector<8x32xi1>, vector<8x32xf32>
    %88 = vector.shape_cast %84 : vector<8x1xi1> to vector<8x1xi1>
    %89 = vector.broadcast %88 : vector<8x1xi1> to vector<8x32xi1>
    %90 = arith.select %89, %80, %3 : vector<8x32xi1>, vector<8x32xf32>
    %cst_20 = arith.constant 0.000000e+00 : f32
    %91 = vector.shape_cast %84 : vector<8x1xi1> to vector<8x1xi1>
    %92 = vector.broadcast %91 : vector<8x1xi1> to vector<8x32xi1>
    %93 = vector.broadcast %cst_20 : f32 to vector<8x32xf32>
    %94 = arith.select %92, %82, %93 : vector<8x32xi1>, vector<8x32xf32>
    %95 = arith.index_cast %51 : i32 to index
    %c0_21 = arith.constant 0 : index
    %c0_22 = arith.constant 0 : index
    %96 = vector.load %arg5[%95, %c0_21, %c0_22] : memref<8x8x32xf32, #tpu.memory_space<vmem>>, vector<1x8x32xf32>
    %97 = vector.shape_cast %96 : vector<1x8x32xf32> to vector<8x32xf32>
    %98 = vector.shape_cast %94 : vector<8x32xf32> to vector<1x8x32xf32>
    tpu.vector_store %arg5[%95, %c0_21, %c0_22], %98 {strides = array<i32>} : memref<8x8x32xf32, #tpu.memory_space<vmem>>, vector<1x8x32xf32>,
    %c1_i32 = arith.constant 1 : i32
    %99 = arith.index_cast %c1_i32 : i32 to index
    %c0_23 = arith.constant 0 : index
    %c0_24 = arith.constant 0 : index
    %100 = vector.load %arg1[%99, %c0_23, %c0_24] : memref<8x8x256xf32, #tpu.memory_space<vmem>>, vector<1x8x256xf32>
    %101 = vector.shape_cast %100 : vector<1x8x256xf32> to vector<8x256xf32>
    %102 = vector.extract_strided_slice %101 {offsets = [0, 0], sizes = [8, 128], strides = [1, 1]} : vector<8x256xf32> to vector<8x128xf32>
    %cst_25 = arith.constant dense<0.000000e+00> : vector<8x128xf32>
    %103 = tpu.matmul %39, %1, %cst_25 {dimension_numbers = #tpu.dot_dimension_numbers<[1], [0], [0], [1], [0, 0, 1, 1], [], []>} : vector<8x32xf32>, vector<32x128xf32>, vector<8x128xf32> -> vector<8x128xf32>
    %104 = arith.addf %102, %103 : vector<8x128xf32>
    %105 = vector.extract_strided_slice %104 {offsets = [0, 0], sizes = [8, 32], strides = [1, 1]} : vector<8x128xf32> to vector<8x32xf32>
    %106 = arith.negf %105 : vector<8x32xf32>
    %107 = math.exp %106 : vector<8x32xf32>
    %cst_26 = arith.constant 1.000000e+00 : f32
    %108 = vector.broadcast %cst_26 : f32 to vector<8x32xf32>
    %109 = arith.addf %108, %107 : vector<8x32xf32>
    %110 = arith.divf %108, %109 : vector<8x32xf32>
    %111 = vector.extract_strided_slice %104 {offsets = [0, 32], sizes = [8, 32], strides = [1, 1]} : vector<8x128xf32> to vector<8x32xf32>
    %112 = arith.negf %111 : vector<8x32xf32>
    %113 = math.exp %112 : vector<8x32xf32>
    %cst_27 = arith.constant 1.000000e+00 : f32
    %114 = vector.broadcast %cst_27 : f32 to vector<8x32xf32>
    %115 = arith.addf %114, %113 : vector<8x32xf32>
    %116 = arith.divf %114, %115 : vector<8x32xf32>
    %117 = vector.extract_strided_slice %104 {offsets = [0, 64], sizes = [8, 32], strides = [1, 1]} : vector<8x128xf32> to vector<8x32xf32>
    %118 = math.tanh %117 : vector<8x32xf32>
    %119 = vector.extract_strided_slice %104 {offsets = [0, 96], sizes = [8, 32], strides = [1, 1]} : vector<8x128xf32> to vector<8x32xf32>
    %120 = arith.negf %119 : vector<8x32xf32>
    %121 = math.exp %120 : vector<8x32xf32>
    %cst_28 = arith.constant 1.000000e+00 : f32
    %122 = vector.broadcast %cst_28 : f32 to vector<8x32xf32>
    %123 = arith.addf %122, %121 : vector<8x32xf32>
    %124 = arith.divf %122, %123 : vector<8x32xf32>
    %125 = arith.mulf %116, %42 : vector<8x32xf32>
    %126 = arith.mulf %110, %118 : vector<8x32xf32>
    %127 = arith.addf %125, %126 : vector<8x32xf32>
    %128 = math.tanh %127 : vector<8x32xf32>
    %129 = arith.mulf %124, %128 : vector<8x32xf32>
    %130 = vector.broadcast %c1_i32 : i32 to vector<8x1xi32>
    %131 = arith.cmpi slt, %130, %0 : vector<8x1xi32>
    %132 = vector.shape_cast %131 : vector<8x1xi1> to vector<8x1xi1>
    %133 = vector.broadcast %132 : vector<8x1xi1> to vector<8x32xi1>
    %134 = arith.select %133, %129, %39 : vector<8x32xi1>, vector<8x32xf32>
    %135 = vector.shape_cast %131 : vector<8x1xi1> to vector<8x1xi1>
    %136 = vector.broadcast %135 : vector<8x1xi1> to vector<8x32xi1>
    %137 = arith.select %136, %127, %42 : vector<8x32xi1>, vector<8x32xf32>
    %cst_29 = arith.constant 0.000000e+00 : f32
    %138 = vector.shape_cast %131 : vector<8x1xi1> to vector<8x1xi1>
    %139 = vector.broadcast %138 : vector<8x1xi1> to vector<8x32xi1>
    %140 = vector.broadcast %cst_29 : f32 to vector<8x32xf32>
    %141 = arith.select %139, %129, %140 : vector<8x32xi1>, vector<8x32xf32>
    %142 = arith.index_cast %c1_i32 : i32 to index
    %c0_30 = arith.constant 0 : index
    %c0_31 = arith.constant 0 : index
    %143 = vector.load %arg4[%142, %c0_30, %c0_31] : memref<8x8x32xf32, #tpu.memory_space<vmem>>, vector<1x8x32xf32>
    %144 = vector.shape_cast %143 : vector<1x8x32xf32> to vector<8x32xf32>
    %145 = vector.shape_cast %141 : vector<8x32xf32> to vector<1x8x32xf32>
    tpu.vector_store %arg4[%142, %c0_30, %c0_31], %145 {strides = array<i32>} : memref<8x8x32xf32, #tpu.memory_space<vmem>>, vector<1x8x32xf32>,
    %c7_i32_32 = arith.constant 7 : i32
    %146 = arith.subi %c7_i32_32, %c1_i32 : i32
    %147 = arith.index_cast %146 : i32 to index
    %c0_33 = arith.constant 0 : index
    %c0_34 = arith.constant 0 : index
    %148 = vector.load %arg1[%147, %c0_33, %c0_34] : memref<8x8x256xf32, #tpu.memory_space<vmem>>, vector<1x8x256xf32>
    %149 = vector.shape_cast %148 : vector<1x8x256xf32> to vector<8x256xf32>
    %150 = vector.extract_strided_slice %149 {offsets = [0, 128], sizes = [8, 128], strides = [1, 1]} : vector<8x256xf32> to vector<8x128xf32>
    %cst_35 = arith.constant dense<0.000000e+00> : vector<8x128xf32>
    %151 = tpu.matmul %87, %2, %cst_35 {dimension_numbers = #tpu.dot_dimension_numbers<[1], [0], [0], [1], [0, 0, 1, 1], [], []>} : vector<8x32xf32>, vector<32x128xf32>, vector<8x128xf32> -> vector<8x128xf32>
    %152 = arith.addf %150, %151 : vector<8x128xf32>
    %153 = vector.extract_strided_slice %152 {offsets = [0, 0], sizes = [8, 32], strides = [1, 1]} : vector<8x128xf32> to vector<8x32xf32>
    %154 = arith.negf %153 : vector<8x32xf32>
    %155 = math.exp %154 : vector<8x32xf32>
    %cst_36 = arith.constant 1.000000e+00 : f32
    %156 = vector.broadcast %cst_36 : f32 to vector<8x32xf32>
    %157 = arith.addf %156, %155 : vector<8x32xf32>
    %158 = arith.divf %156, %157 : vector<8x32xf32>
    %159 = vector.extract_strided_slice %152 {offsets = [0, 32], sizes = [8, 32], strides = [1, 1]} : vector<8x128xf32> to vector<8x32xf32>
    %160 = arith.negf %159 : vector<8x32xf32>
    %161 = math.exp %160 : vector<8x32xf32>
    %cst_37 = arith.constant 1.000000e+00 : f32
    %162 = vector.broadcast %cst_37 : f32 to vector<8x32xf32>
    %163 = arith.addf %162, %161 : vector<8x32xf32>
    %164 = arith.divf %162, %163 : vector<8x32xf32>
    %165 = vector.extract_strided_slice %152 {offsets = [0, 64], sizes = [8, 32], strides = [1, 1]} : vector<8x128xf32> to vector<8x32xf32>
    %166 = math.tanh %165 : vector<8x32xf32>
    %167 = vector.extract_strided_slice %152 {offsets = [0, 96], sizes = [8, 32], strides = [1, 1]} : vector<8x128xf32> to vector<8x32xf32>
    %168 = arith.negf %167 : vector<8x32xf32>
    %169 = math.exp %168 : vector<8x32xf32>
    %cst_38 = arith.constant 1.000000e+00 : f32
    %170 = vector.broadcast %cst_38 : f32 to vector<8x32xf32>
    %171 = arith.addf %170, %169 : vector<8x32xf32>
    %172 = arith.divf %170, %171 : vector<8x32xf32>
    %173 = arith.mulf %164, %90 : vector<8x32xf32>
    %174 = arith.mulf %158, %166 : vector<8x32xf32>
    %175 = arith.addf %173, %174 : vector<8x32xf32>
    %176 = math.tanh %175 : vector<8x32xf32>
    %177 = arith.mulf %172, %176 : vector<8x32xf32>
    %178 = vector.broadcast %146 : i32 to vector<8x1xi32>
    %179 = arith.cmpi slt, %178, %0 : vector<8x1xi32>
    %180 = vector.shape_cast %179 : vector<8x1xi1> to vector<8x1xi1>
    %181 = vector.broadcast %180 : vector<8x1xi1> to vector<8x32xi1>
    %182 = arith.select %181, %177, %87 : vector<8x32xi1>, vector<8x32xf32>
    %183 = vector.shape_cast %179 : vector<8x1xi1> to vector<8x1xi1>
    %184 = vector.broadcast %183 : vector<8x1xi1> to vector<8x32xi1>
    %185 = arith.select %184, %175, %90 : vector<8x32xi1>, vector<8x32xf32>
    %cst_39 = arith.constant 0.000000e+00 : f32
    %186 = vector.shape_cast %179 : vector<8x1xi1> to vector<8x1xi1>
    %187 = vector.broadcast %186 : vector<8x1xi1> to vector<8x32xi1>
    %188 = vector.broadcast %cst_39 : f32 to vector<8x32xf32>
    %189 = arith.select %187, %177, %188 : vector<8x32xi1>, vector<8x32xf32>
    %190 = arith.index_cast %146 : i32 to index
    %c0_40 = arith.constant 0 : index
    %c0_41 = arith.constant 0 : index
    %191 = vector.load %arg5[%190, %c0_40, %c0_41] : memref<8x8x32xf32, #tpu.memory_space<vmem>>, vector<1x8x32xf32>
    %192 = vector.shape_cast %191 : vector<1x8x32xf32> to vector<8x32xf32>
    %193 = vector.shape_cast %189 : vector<8x32xf32> to vector<1x8x32xf32>
    tpu.vector_store %arg5[%190, %c0_40, %c0_41], %193 {strides = array<i32>} : memref<8x8x32xf32, #tpu.memory_space<vmem>>, vector<1x8x32xf32>,
    %c2_i32 = arith.constant 2 : i32
    %194 = arith.index_cast %c2_i32 : i32 to index
    %c0_42 = arith.constant 0 : index
    %c0_43 = arith.constant 0 : index
    %195 = vector.load %arg1[%194, %c0_42, %c0_43] : memref<8x8x256xf32, #tpu.memory_space<vmem>>, vector<1x8x256xf32>
    %196 = vector.shape_cast %195 : vector<1x8x256xf32> to vector<8x256xf32>
    %197 = vector.extract_strided_slice %196 {offsets = [0, 0], sizes = [8, 128], strides = [1, 1]} : vector<8x256xf32> to vector<8x128xf32>
    %cst_44 = arith.constant dense<0.000000e+00> : vector<8x128xf32>
    %198 = tpu.matmul %134, %1, %cst_44 {dimension_numbers = #tpu.dot_dimension_numbers<[1], [0], [0], [1], [0, 0, 1, 1], [], []>} : vector<8x32xf32>, vector<32x128xf32>, vector<8x128xf32> -> vector<8x128xf32>
    %199 = arith.addf %197, %198 : vector<8x128xf32>
    %200 = vector.extract_strided_slice %199 {offsets = [0, 0], sizes = [8, 32], strides = [1, 1]} : vector<8x128xf32> to vector<8x32xf32>
    %201 = arith.negf %200 : vector<8x32xf32>
    %202 = math.exp %201 : vector<8x32xf32>
    %cst_45 = arith.constant 1.000000e+00 : f32
    %203 = vector.broadcast %cst_45 : f32 to vector<8x32xf32>
    %204 = arith.addf %203, %202 : vector<8x32xf32>
    %205 = arith.divf %203, %204 : vector<8x32xf32>
    %206 = vector.extract_strided_slice %199 {offsets = [0, 32], sizes = [8, 32], strides = [1, 1]} : vector<8x128xf32> to vector<8x32xf32>
    %207 = arith.negf %206 : vector<8x32xf32>
    %208 = math.exp %207 : vector<8x32xf32>
    %cst_46 = arith.constant 1.000000e+00 : f32
    %209 = vector.broadcast %cst_46 : f32 to vector<8x32xf32>
    %210 = arith.addf %209, %208 : vector<8x32xf32>
    %211 = arith.divf %209, %210 : vector<8x32xf32>
    %212 = vector.extract_strided_slice %199 {offsets = [0, 64], sizes = [8, 32], strides = [1, 1]} : vector<8x128xf32> to vector<8x32xf32>
    %213 = math.tanh %212 : vector<8x32xf32>
    %214 = vector.extract_strided_slice %199 {offsets = [0, 96], sizes = [8, 32], strides = [1, 1]} : vector<8x128xf32> to vector<8x32xf32>
    %215 = arith.negf %214 : vector<8x32xf32>
    %216 = math.exp %215 : vector<8x32xf32>
    %cst_47 = arith.constant 1.000000e+00 : f32
    %217 = vector.broadcast %cst_47 : f32 to vector<8x32xf32>
    %218 = arith.addf %217, %216 : vector<8x32xf32>
    %219 = arith.divf %217, %218 : vector<8x32xf32>
    %220 = arith.mulf %211, %137 : vector<8x32xf32>
    %221 = arith.mulf %205, %213 : vector<8x32xf32>
    %222 = arith.addf %220, %221 : vector<8x32xf32>
    %223 = math.tanh %222 : vector<8x32xf32>
    %224 = arith.mulf %219, %223 : vector<8x32xf32>
    %225 = vector.broadcast %c2_i32 : i32 to vector<8x1xi32>
    %226 = arith.cmpi slt, %225, %0 : vector<8x1xi32>
    %227 = vector.shape_cast %226 : vector<8x1xi1> to vector<8x1xi1>
    %228 = vector.broadcast %227 : vector<8x1xi1> to vector<8x32xi1>
    %229 = arith.select %228, %224, %134 : vector<8x32xi1>, vector<8x32xf32>
    %230 = vector.shape_cast %226 : vector<8x1xi1> to vector<8x1xi1>
    %231 = vector.broadcast %230 : vector<8x1xi1> to vector<8x32xi1>
    %232 = arith.select %231, %222, %137 : vector<8x32xi1>, vector<8x32xf32>
    %cst_48 = arith.constant 0.000000e+00 : f32
    %233 = vector.shape_cast %226 : vector<8x1xi1> to vector<8x1xi1>
    %234 = vector.broadcast %233 : vector<8x1xi1> to vector<8x32xi1>
    %235 = vector.broadcast %cst_48 : f32 to vector<8x32xf32>
    %236 = arith.select %234, %224, %235 : vector<8x32xi1>, vector<8x32xf32>
    %237 = arith.index_cast %c2_i32 : i32 to index
    %c0_49 = arith.constant 0 : index
    %c0_50 = arith.constant 0 : index
    %238 = vector.load %arg4[%237, %c0_49, %c0_50] : memref<8x8x32xf32, #tpu.memory_space<vmem>>, vector<1x8x32xf32>
    %239 = vector.shape_cast %238 : vector<1x8x32xf32> to vector<8x32xf32>
    %240 = vector.shape_cast %236 : vector<8x32xf32> to vector<1x8x32xf32>
    tpu.vector_store %arg4[%237, %c0_49, %c0_50], %240 {strides = array<i32>} : memref<8x8x32xf32, #tpu.memory_space<vmem>>, vector<1x8x32xf32>,
    %c7_i32_51 = arith.constant 7 : i32
    %241 = arith.subi %c7_i32_51, %c2_i32 : i32
    %242 = arith.index_cast %241 : i32 to index
    %c0_52 = arith.constant 0 : index
    %c0_53 = arith.constant 0 : index
    %243 = vector.load %arg1[%242, %c0_52, %c0_53] : memref<8x8x256xf32, #tpu.memory_space<vmem>>, vector<1x8x256xf32>
    %244 = vector.shape_cast %243 : vector<1x8x256xf32> to vector<8x256xf32>
    %245 = vector.extract_strided_slice %244 {offsets = [0, 128], sizes = [8, 128], strides = [1, 1]} : vector<8x256xf32> to vector<8x128xf32>
    %cst_54 = arith.constant dense<0.000000e+00> : vector<8x128xf32>
    %246 = tpu.matmul %182, %2, %cst_54 {dimension_numbers = #tpu.dot_dimension_numbers<[1], [0], [0], [1], [0, 0, 1, 1], [], []>} : vector<8x32xf32>, vector<32x128xf32>, vector<8x128xf32> -> vector<8x128xf32>
    %247 = arith.addf %245, %246 : vector<8x128xf32>
    %248 = vector.extract_strided_slice %247 {offsets = [0, 0], sizes = [8, 32], strides = [1, 1]} : vector<8x128xf32> to vector<8x32xf32>
    %249 = arith.negf %248 : vector<8x32xf32>
    %250 = math.exp %249 : vector<8x32xf32>
    %cst_55 = arith.constant 1.000000e+00 : f32
    %251 = vector.broadcast %cst_55 : f32 to vector<8x32xf32>
    %252 = arith.addf %251, %250 : vector<8x32xf32>
    %253 = arith.divf %251, %252 : vector<8x32xf32>
    %254 = vector.extract_strided_slice %247 {offsets = [0, 32], sizes = [8, 32], strides = [1, 1]} : vector<8x128xf32> to vector<8x32xf32>
    %255 = arith.negf %254 : vector<8x32xf32>
    %256 = math.exp %255 : vector<8x32xf32>
    %cst_56 = arith.constant 1.000000e+00 : f32
    %257 = vector.broadcast %cst_56 : f32 to vector<8x32xf32>
    %258 = arith.addf %257, %256 : vector<8x32xf32>
    %259 = arith.divf %257, %258 : vector<8x32xf32>
    %260 = vector.extract_strided_slice %247 {offsets = [0, 64], sizes = [8, 32], strides = [1, 1]} : vector<8x128xf32> to vector<8x32xf32>
    %261 = math.tanh %260 : vector<8x32xf32>
    %262 = vector.extract_strided_slice %247 {offsets = [0, 96], sizes = [8, 32], strides = [1, 1]} : vector<8x128xf32> to vector<8x32xf32>
    %263 = arith.negf %262 : vector<8x32xf32>
    %264 = math.exp %263 : vector<8x32xf32>
    %cst_57 = arith.constant 1.000000e+00 : f32
    %265 = vector.broadcast %cst_57 : f32 to vector<8x32xf32>
    %266 = arith.addf %265, %264 : vector<8x32xf32>
    %267 = arith.divf %265, %266 : vector<8x32xf32>
    %268 = arith.mulf %259, %185 : vector<8x32xf32>
    %269 = arith.mulf %253, %261 : vector<8x32xf32>
    %270 = arith.addf %268, %269 : vector<8x32xf32>
    %271 = math.tanh %270 : vector<8x32xf32>
    %272 = arith.mulf %267, %271 : vector<8x32xf32>
    %273 = vector.broadcast %241 : i32 to vector<8x1xi32>
    %274 = arith.cmpi slt, %273, %0 : vector<8x1xi32>
    %275 = vector.shape_cast %274 : vector<8x1xi1> to vector<8x1xi1>
    %276 = vector.broadcast %275 : vector<8x1xi1> to vector<8x32xi1>
    %277 = arith.select %276, %272, %182 : vector<8x32xi1>, vector<8x32xf32>
    %278 = vector.shape_cast %274 : vector<8x1xi1> to vector<8x1xi1>
    %279 = vector.broadcast %278 : vector<8x1xi1> to vector<8x32xi1>
    %280 = arith.select %279, %270, %185 : vector<8x32xi1>, vector<8x32xf32>
    %cst_58 = arith.constant 0.000000e+00 : f32
    %281 = vector.shape_cast %274 : vector<8x1xi1> to vector<8x1xi1>
    %282 = vector.broadcast %281 : vector<8x1xi1> to vector<8x32xi1>
    %283 = vector.broadcast %cst_58 : f32 to vector<8x32xf32>
    %284 = arith.select %282, %272, %283 : vector<8x32xi1>, vector<8x32xf32>
    %285 = arith.index_cast %241 : i32 to index
    %c0_59 = arith.constant 0 : index
    %c0_60 = arith.constant 0 : index
    %286 = vector.load %arg5[%285, %c0_59, %c0_60] : memref<8x8x32xf32, #tpu.memory_space<vmem>>, vector<1x8x32xf32>
    %287 = vector.shape_cast %286 : vector<1x8x32xf32> to vector<8x32xf32>
    %288 = vector.shape_cast %284 : vector<8x32xf32> to vector<1x8x32xf32>
    tpu.vector_store %arg5[%285, %c0_59, %c0_60], %288 {strides = array<i32>} : memref<8x8x32xf32, #tpu.memory_space<vmem>>, vector<1x8x32xf32>,
    %c3_i32 = arith.constant 3 : i32
    %289 = arith.index_cast %c3_i32 : i32 to index
    %c0_61 = arith.constant 0 : index
    %c0_62 = arith.constant 0 : index
    %290 = vector.load %arg1[%289, %c0_61, %c0_62] : memref<8x8x256xf32, #tpu.memory_space<vmem>>, vector<1x8x256xf32>
    %291 = vector.shape_cast %290 : vector<1x8x256xf32> to vector<8x256xf32>
    %292 = vector.extract_strided_slice %291 {offsets = [0, 0], sizes = [8, 128], strides = [1, 1]} : vector<8x256xf32> to vector<8x128xf32>
    %cst_63 = arith.constant dense<0.000000e+00> : vector<8x128xf32>
    %293 = tpu.matmul %229, %1, %cst_63 {dimension_numbers = #tpu.dot_dimension_numbers<[1], [0], [0], [1], [0, 0, 1, 1], [], []>} : vector<8x32xf32>, vector<32x128xf32>, vector<8x128xf32> -> vector<8x128xf32>
    %294 = arith.addf %292, %293 : vector<8x128xf32>
    %295 = vector.extract_strided_slice %294 {offsets = [0, 0], sizes = [8, 32], strides = [1, 1]} : vector<8x128xf32> to vector<8x32xf32>
    %296 = arith.negf %295 : vector<8x32xf32>
    %297 = math.exp %296 : vector<8x32xf32>
    %cst_64 = arith.constant 1.000000e+00 : f32
    %298 = vector.broadcast %cst_64 : f32 to vector<8x32xf32>
    %299 = arith.addf %298, %297 : vector<8x32xf32>
    %300 = arith.divf %298, %299 : vector<8x32xf32>
    %301 = vector.extract_strided_slice %294 {offsets = [0, 32], sizes = [8, 32], strides = [1, 1]} : vector<8x128xf32> to vector<8x32xf32>
    %302 = arith.negf %301 : vector<8x32xf32>
    %303 = math.exp %302 : vector<8x32xf32>
    %cst_65 = arith.constant 1.000000e+00 : f32
    %304 = vector.broadcast %cst_65 : f32 to vector<8x32xf32>
    %305 = arith.addf %304, %303 : vector<8x32xf32>
    %306 = arith.divf %304, %305 : vector<8x32xf32>
    %307 = vector.extract_strided_slice %294 {offsets = [0, 64], sizes = [8, 32], strides = [1, 1]} : vector<8x128xf32> to vector<8x32xf32>
    %308 = math.tanh %307 : vector<8x32xf32>
    %309 = vector.extract_strided_slice %294 {offsets = [0, 96], sizes = [8, 32], strides = [1, 1]} : vector<8x128xf32> to vector<8x32xf32>
    %310 = arith.negf %309 : vector<8x32xf32>
    %311 = math.exp %310 : vector<8x32xf32>
    %cst_66 = arith.constant 1.000000e+00 : f32
    %312 = vector.broadcast %cst_66 : f32 to vector<8x32xf32>
    %313 = arith.addf %312, %311 : vector<8x32xf32>
    %314 = arith.divf %312, %313 : vector<8x32xf32>
    %315 = arith.mulf %306, %232 : vector<8x32xf32>
    %316 = arith.mulf %300, %308 : vector<8x32xf32>
    %317 = arith.addf %315, %316 : vector<8x32xf32>
    %318 = math.tanh %317 : vector<8x32xf32>
    %319 = arith.mulf %314, %318 : vector<8x32xf32>
    %320 = vector.broadcast %c3_i32 : i32 to vector<8x1xi32>
    %321 = arith.cmpi slt, %320, %0 : vector<8x1xi32>
    %322 = vector.shape_cast %321 : vector<8x1xi1> to vector<8x1xi1>
    %323 = vector.broadcast %322 : vector<8x1xi1> to vector<8x32xi1>
    %324 = arith.select %323, %319, %229 : vector<8x32xi1>, vector<8x32xf32>
    %325 = vector.shape_cast %321 : vector<8x1xi1> to vector<8x1xi1>
    %326 = vector.broadcast %325 : vector<8x1xi1> to vector<8x32xi1>
    %327 = arith.select %326, %317, %232 : vector<8x32xi1>, vector<8x32xf32>
    %cst_67 = arith.constant 0.000000e+00 : f32
    %328 = vector.shape_cast %321 : vector<8x1xi1> to vector<8x1xi1>
    %329 = vector.broadcast %328 : vector<8x1xi1> to vector<8x32xi1>
    %330 = vector.broadcast %cst_67 : f32 to vector<8x32xf32>
    %331 = arith.select %329, %319, %330 : vector<8x32xi1>, vector<8x32xf32>
    %332 = arith.index_cast %c3_i32 : i32 to index
    %c0_68 = arith.constant 0 : index
    %c0_69 = arith.constant 0 : index
    %333 = vector.load %arg4[%332, %c0_68, %c0_69] : memref<8x8x32xf32, #tpu.memory_space<vmem>>, vector<1x8x32xf32>
    %334 = vector.shape_cast %333 : vector<1x8x32xf32> to vector<8x32xf32>
    %335 = vector.shape_cast %331 : vector<8x32xf32> to vector<1x8x32xf32>
    tpu.vector_store %arg4[%332, %c0_68, %c0_69], %335 {strides = array<i32>} : memref<8x8x32xf32, #tpu.memory_space<vmem>>, vector<1x8x32xf32>,
    %c7_i32_70 = arith.constant 7 : i32
    %336 = arith.subi %c7_i32_70, %c3_i32 : i32
    %337 = arith.index_cast %336 : i32 to index
    %c0_71 = arith.constant 0 : index
    %c0_72 = arith.constant 0 : index
    %338 = vector.load %arg1[%337, %c0_71, %c0_72] : memref<8x8x256xf32, #tpu.memory_space<vmem>>, vector<1x8x256xf32>
    %339 = vector.shape_cast %338 : vector<1x8x256xf32> to vector<8x256xf32>
    %340 = vector.extract_strided_slice %339 {offsets = [0, 128], sizes = [8, 128], strides = [1, 1]} : vector<8x256xf32> to vector<8x128xf32>
    %cst_73 = arith.constant dense<0.000000e+00> : vector<8x128xf32>
    %341 = tpu.matmul %277, %2, %cst_73 {dimension_numbers = #tpu.dot_dimension_numbers<[1], [0], [0], [1], [0, 0, 1, 1], [], []>} : vector<8x32xf32>, vector<32x128xf32>, vector<8x128xf32> -> vector<8x128xf32>
    %342 = arith.addf %340, %341 : vector<8x128xf32>
    %343 = vector.extract_strided_slice %342 {offsets = [0, 0], sizes = [8, 32], strides = [1, 1]} : vector<8x128xf32> to vector<8x32xf32>
    %344 = arith.negf %343 : vector<8x32xf32>
    %345 = math.exp %344 : vector<8x32xf32>
    %cst_74 = arith.constant 1.000000e+00 : f32
    %346 = vector.broadcast %cst_74 : f32 to vector<8x32xf32>
    %347 = arith.addf %346, %345 : vector<8x32xf32>
    %348 = arith.divf %346, %347 : vector<8x32xf32>
    %349 = vector.extract_strided_slice %342 {offsets = [0, 32], sizes = [8, 32], strides = [1, 1]} : vector<8x128xf32> to vector<8x32xf32>
    %350 = arith.negf %349 : vector<8x32xf32>
    %351 = math.exp %350 : vector<8x32xf32>
    %cst_75 = arith.constant 1.000000e+00 : f32
    %352 = vector.broadcast %cst_75 : f32 to vector<8x32xf32>
    %353 = arith.addf %352, %351 : vector<8x32xf32>
    %354 = arith.divf %352, %353 : vector<8x32xf32>
    %355 = vector.extract_strided_slice %342 {offsets = [0, 64], sizes = [8, 32], strides = [1, 1]} : vector<8x128xf32> to vector<8x32xf32>
    %356 = math.tanh %355 : vector<8x32xf32>
    %357 = vector.extract_strided_slice %342 {offsets = [0, 96], sizes = [8, 32], strides = [1, 1]} : vector<8x128xf32> to vector<8x32xf32>
    %358 = arith.negf %357 : vector<8x32xf32>
    %359 = math.exp %358 : vector<8x32xf32>
    %cst_76 = arith.constant 1.000000e+00 : f32
    %360 = vector.broadcast %cst_76 : f32 to vector<8x32xf32>
    %361 = arith.addf %360, %359 : vector<8x32xf32>
    %362 = arith.divf %360, %361 : vector<8x32xf32>
    %363 = arith.mulf %354, %280 : vector<8x32xf32>
    %364 = arith.mulf %348, %356 : vector<8x32xf32>
    %365 = arith.addf %363, %364 : vector<8x32xf32>
    %366 = math.tanh %365 : vector<8x32xf32>
    %367 = arith.mulf %362, %366 : vector<8x32xf32>
    %368 = vector.broadcast %336 : i32 to vector<8x1xi32>
    %369 = arith.cmpi slt, %368, %0 : vector<8x1xi32>
    %370 = vector.shape_cast %369 : vector<8x1xi1> to vector<8x1xi1>
    %371 = vector.broadcast %370 : vector<8x1xi1> to vector<8x32xi1>
    %372 = arith.select %371, %367, %277 : vector<8x32xi1>, vector<8x32xf32>
    %373 = vector.shape_cast %369 : vector<8x1xi1> to vector<8x1xi1>
    %374 = vector.broadcast %373 : vector<8x1xi1> to vector<8x32xi1>
    %375 = arith.select %374, %365, %280 : vector<8x32xi1>, vector<8x32xf32>
    %cst_77 = arith.constant 0.000000e+00 : f32
    %376 = vector.shape_cast %369 : vector<8x1xi1> to vector<8x1xi1>
    %377 = vector.broadcast %376 : vector<8x1xi1> to vector<8x32xi1>
    %378 = vector.broadcast %cst_77 : f32 to vector<8x32xf32>
    %379 = arith.select %377, %367, %378 : vector<8x32xi1>, vector<8x32xf32>
    %380 = arith.index_cast %336 : i32 to index
    %c0_78 = arith.constant 0 : index
    %c0_79 = arith.constant 0 : index
    %381 = vector.load %arg5[%380, %c0_78, %c0_79] : memref<8x8x32xf32, #tpu.memory_space<vmem>>, vector<1x8x32xf32>
    %382 = vector.shape_cast %381 : vector<1x8x32xf32> to vector<8x32xf32>
    %383 = vector.shape_cast %379 : vector<8x32xf32> to vector<1x8x32xf32>
    tpu.vector_store %arg5[%380, %c0_78, %c0_79], %383 {strides = array<i32>} : memref<8x8x32xf32, #tpu.memory_space<vmem>>, vector<1x8x32xf32>,
    %c4_i32 = arith.constant 4 : i32
    %384 = arith.index_cast %c4_i32 : i32 to index
    %c0_80 = arith.constant 0 : index
    %c0_81 = arith.constant 0 : index
    %385 = vector.load %arg1[%384, %c0_80, %c0_81] : memref<8x8x256xf32, #tpu.memory_space<vmem>>, vector<1x8x256xf32>
    %386 = vector.shape_cast %385 : vector<1x8x256xf32> to vector<8x256xf32>
    %387 = vector.extract_strided_slice %386 {offsets = [0, 0], sizes = [8, 128], strides = [1, 1]} : vector<8x256xf32> to vector<8x128xf32>
    %cst_82 = arith.constant dense<0.000000e+00> : vector<8x128xf32>
    %388 = tpu.matmul %324, %1, %cst_82 {dimension_numbers = #tpu.dot_dimension_numbers<[1], [0], [0], [1], [0, 0, 1, 1], [], []>} : vector<8x32xf32>, vector<32x128xf32>, vector<8x128xf32> -> vector<8x128xf32>
    %389 = arith.addf %387, %388 : vector<8x128xf32>
    %390 = vector.extract_strided_slice %389 {offsets = [0, 0], sizes = [8, 32], strides = [1, 1]} : vector<8x128xf32> to vector<8x32xf32>
    %391 = arith.negf %390 : vector<8x32xf32>
    %392 = math.exp %391 : vector<8x32xf32>
    %cst_83 = arith.constant 1.000000e+00 : f32
    %393 = vector.broadcast %cst_83 : f32 to vector<8x32xf32>
    %394 = arith.addf %393, %392 : vector<8x32xf32>
    %395 = arith.divf %393, %394 : vector<8x32xf32>
    %396 = vector.extract_strided_slice %389 {offsets = [0, 32], sizes = [8, 32], strides = [1, 1]} : vector<8x128xf32> to vector<8x32xf32>
    %397 = arith.negf %396 : vector<8x32xf32>
    %398 = math.exp %397 : vector<8x32xf32>
    %cst_84 = arith.constant 1.000000e+00 : f32
    %399 = vector.broadcast %cst_84 : f32 to vector<8x32xf32>
    %400 = arith.addf %399, %398 : vector<8x32xf32>
    %401 = arith.divf %399, %400 : vector<8x32xf32>
    %402 = vector.extract_strided_slice %389 {offsets = [0, 64], sizes = [8, 32], strides = [1, 1]} : vector<8x128xf32> to vector<8x32xf32>
    %403 = math.tanh %402 : vector<8x32xf32>
    %404 = vector.extract_strided_slice %389 {offsets = [0, 96], sizes = [8, 32], strides = [1, 1]} : vector<8x128xf32> to vector<8x32xf32>
    %405 = arith.negf %404 : vector<8x32xf32>
    %406 = math.exp %405 : vector<8x32xf32>
    %cst_85 = arith.constant 1.000000e+00 : f32
    %407 = vector.broadcast %cst_85 : f32 to vector<8x32xf32>
    %408 = arith.addf %407, %406 : vector<8x32xf32>
    %409 = arith.divf %407, %408 : vector<8x32xf32>
    %410 = arith.mulf %401, %327 : vector<8x32xf32>
    %411 = arith.mulf %395, %403 : vector<8x32xf32>
    %412 = arith.addf %410, %411 : vector<8x32xf32>
    %413 = math.tanh %412 : vector<8x32xf32>
    %414 = arith.mulf %409, %413 : vector<8x32xf32>
    %415 = vector.broadcast %c4_i32 : i32 to vector<8x1xi32>
    %416 = arith.cmpi slt, %415, %0 : vector<8x1xi32>
    %417 = vector.shape_cast %416 : vector<8x1xi1> to vector<8x1xi1>
    %418 = vector.broadcast %417 : vector<8x1xi1> to vector<8x32xi1>
    %419 = arith.select %418, %414, %324 : vector<8x32xi1>, vector<8x32xf32>
    %420 = vector.shape_cast %416 : vector<8x1xi1> to vector<8x1xi1>
    %421 = vector.broadcast %420 : vector<8x1xi1> to vector<8x32xi1>
    %422 = arith.select %421, %412, %327 : vector<8x32xi1>, vector<8x32xf32>
    %cst_86 = arith.constant 0.000000e+00 : f32
    %423 = vector.shape_cast %416 : vector<8x1xi1> to vector<8x1xi1>
    %424 = vector.broadcast %423 : vector<8x1xi1> to vector<8x32xi1>
    %425 = vector.broadcast %cst_86 : f32 to vector<8x32xf32>
    %426 = arith.select %424, %414, %425 : vector<8x32xi1>, vector<8x32xf32>
    %427 = arith.index_cast %c4_i32 : i32 to index
    %c0_87 = arith.constant 0 : index
    %c0_88 = arith.constant 0 : index
    %428 = vector.load %arg4[%427, %c0_87, %c0_88] : memref<8x8x32xf32, #tpu.memory_space<vmem>>, vector<1x8x32xf32>
    %429 = vector.shape_cast %428 : vector<1x8x32xf32> to vector<8x32xf32>
    %430 = vector.shape_cast %426 : vector<8x32xf32> to vector<1x8x32xf32>
    tpu.vector_store %arg4[%427, %c0_87, %c0_88], %430 {strides = array<i32>} : memref<8x8x32xf32, #tpu.memory_space<vmem>>, vector<1x8x32xf32>,
    %c7_i32_89 = arith.constant 7 : i32
    %431 = arith.subi %c7_i32_89, %c4_i32 : i32
    %432 = arith.index_cast %431 : i32 to index
    %c0_90 = arith.constant 0 : index
    %c0_91 = arith.constant 0 : index
    %433 = vector.load %arg1[%432, %c0_90, %c0_91] : memref<8x8x256xf32, #tpu.memory_space<vmem>>, vector<1x8x256xf32>
    %434 = vector.shape_cast %433 : vector<1x8x256xf32> to vector<8x256xf32>
    %435 = vector.extract_strided_slice %434 {offsets = [0, 128], sizes = [8, 128], strides = [1, 1]} : vector<8x256xf32> to vector<8x128xf32>
    %cst_92 = arith.constant dense<0.000000e+00> : vector<8x128xf32>
    %436 = tpu.matmul %372, %2, %cst_92 {dimension_numbers = #tpu.dot_dimension_numbers<[1], [0], [0], [1], [0, 0, 1, 1], [], []>} : vector<8x32xf32>, vector<32x128xf32>, vector<8x128xf32> -> vector<8x128xf32>
    %437 = arith.addf %435, %436 : vector<8x128xf32>
    %438 = vector.extract_strided_slice %437 {offsets = [0, 0], sizes = [8, 32], strides = [1, 1]} : vector<8x128xf32> to vector<8x32xf32>
    %439 = arith.negf %438 : vector<8x32xf32>
    %440 = math.exp %439 : vector<8x32xf32>
    %cst_93 = arith.constant 1.000000e+00 : f32
    %441 = vector.broadcast %cst_93 : f32 to vector<8x32xf32>
    %442 = arith.addf %441, %440 : vector<8x32xf32>
    %443 = arith.divf %441, %442 : vector<8x32xf32>
    %444 = vector.extract_strided_slice %437 {offsets = [0, 32], sizes = [8, 32], strides = [1, 1]} : vector<8x128xf32> to vector<8x32xf32>
    %445 = arith.negf %444 : vector<8x32xf32>
    %446 = math.exp %445 : vector<8x32xf32>
    %cst_94 = arith.constant 1.000000e+00 : f32
    %447 = vector.broadcast %cst_94 : f32 to vector<8x32xf32>
    %448 = arith.addf %447, %446 : vector<8x32xf32>
    %449 = arith.divf %447, %448 : vector<8x32xf32>
    %450 = vector.extract_strided_slice %437 {offsets = [0, 64], sizes = [8, 32], strides = [1, 1]} : vector<8x128xf32> to vector<8x32xf32>
    %451 = math.tanh %450 : vector<8x32xf32>
    %452 = vector.extract_strided_slice %437 {offsets = [0, 96], sizes = [8, 32], strides = [1, 1]} : vector<8x128xf32> to vector<8x32xf32>
    %453 = arith.negf %452 : vector<8x32xf32>
    %454 = math.exp %453 : vector<8x32xf32>
    %cst_95 = arith.constant 1.000000e+00 : f32
    %455 = vector.broadcast %cst_95 : f32 to vector<8x32xf32>
    %456 = arith.addf %455, %454 : vector<8x32xf32>
    %457 = arith.divf %455, %456 : vector<8x32xf32>
    %458 = arith.mulf %449, %375 : vector<8x32xf32>
    %459 = arith.mulf %443, %451 : vector<8x32xf32>
    %460 = arith.addf %458, %459 : vector<8x32xf32>
    %461 = math.tanh %460 : vector<8x32xf32>
    %462 = arith.mulf %457, %461 : vector<8x32xf32>
    %463 = vector.broadcast %431 : i32 to vector<8x1xi32>
    %464 = arith.cmpi slt, %463, %0 : vector<8x1xi32>
    %465 = vector.shape_cast %464 : vector<8x1xi1> to vector<8x1xi1>
    %466 = vector.broadcast %465 : vector<8x1xi1> to vector<8x32xi1>
    %467 = arith.select %466, %462, %372 : vector<8x32xi1>, vector<8x32xf32>
    %468 = vector.shape_cast %464 : vector<8x1xi1> to vector<8x1xi1>
    %469 = vector.broadcast %468 : vector<8x1xi1> to vector<8x32xi1>
    %470 = arith.select %469, %460, %375 : vector<8x32xi1>, vector<8x32xf32>
    %cst_96 = arith.constant 0.000000e+00 : f32
    %471 = vector.shape_cast %464 : vector<8x1xi1> to vector<8x1xi1>
    %472 = vector.broadcast %471 : vector<8x1xi1> to vector<8x32xi1>
    %473 = vector.broadcast %cst_96 : f32 to vector<8x32xf32>
    %474 = arith.select %472, %462, %473 : vector<8x32xi1>, vector<8x32xf32>
    %475 = arith.index_cast %431 : i32 to index
    %c0_97 = arith.constant 0 : index
    %c0_98 = arith.constant 0 : index
    %476 = vector.load %arg5[%475, %c0_97, %c0_98] : memref<8x8x32xf32, #tpu.memory_space<vmem>>, vector<1x8x32xf32>
    %477 = vector.shape_cast %476 : vector<1x8x32xf32> to vector<8x32xf32>
    %478 = vector.shape_cast %474 : vector<8x32xf32> to vector<1x8x32xf32>
    tpu.vector_store %arg5[%475, %c0_97, %c0_98], %478 {strides = array<i32>} : memref<8x8x32xf32, #tpu.memory_space<vmem>>, vector<1x8x32xf32>,
    %c5_i32 = arith.constant 5 : i32
    %479 = arith.index_cast %c5_i32 : i32 to index
    %c0_99 = arith.constant 0 : index
    %c0_100 = arith.constant 0 : index
    %480 = vector.load %arg1[%479, %c0_99, %c0_100] : memref<8x8x256xf32, #tpu.memory_space<vmem>>, vector<1x8x256xf32>
    %481 = vector.shape_cast %480 : vector<1x8x256xf32> to vector<8x256xf32>
    %482 = vector.extract_strided_slice %481 {offsets = [0, 0], sizes = [8, 128], strides = [1, 1]} : vector<8x256xf32> to vector<8x128xf32>
    %cst_101 = arith.constant dense<0.000000e+00> : vector<8x128xf32>
    %483 = tpu.matmul %419, %1, %cst_101 {dimension_numbers = #tpu.dot_dimension_numbers<[1], [0], [0], [1], [0, 0, 1, 1], [], []>} : vector<8x32xf32>, vector<32x128xf32>, vector<8x128xf32> -> vector<8x128xf32>
    %484 = arith.addf %482, %483 : vector<8x128xf32>
    %485 = vector.extract_strided_slice %484 {offsets = [0, 0], sizes = [8, 32], strides = [1, 1]} : vector<8x128xf32> to vector<8x32xf32>
    %486 = arith.negf %485 : vector<8x32xf32>
    %487 = math.exp %486 : vector<8x32xf32>
    %cst_102 = arith.constant 1.000000e+00 : f32
    %488 = vector.broadcast %cst_102 : f32 to vector<8x32xf32>
    %489 = arith.addf %488, %487 : vector<8x32xf32>
    %490 = arith.divf %488, %489 : vector<8x32xf32>
    %491 = vector.extract_strided_slice %484 {offsets = [0, 32], sizes = [8, 32], strides = [1, 1]} : vector<8x128xf32> to vector<8x32xf32>
    %492 = arith.negf %491 : vector<8x32xf32>
    %493 = math.exp %492 : vector<8x32xf32>
    %cst_103 = arith.constant 1.000000e+00 : f32
    %494 = vector.broadcast %cst_103 : f32 to vector<8x32xf32>
    %495 = arith.addf %494, %493 : vector<8x32xf32>
    %496 = arith.divf %494, %495 : vector<8x32xf32>
    %497 = vector.extract_strided_slice %484 {offsets = [0, 64], sizes = [8, 32], strides = [1, 1]} : vector<8x128xf32> to vector<8x32xf32>
    %498 = math.tanh %497 : vector<8x32xf32>
    %499 = vector.extract_strided_slice %484 {offsets = [0, 96], sizes = [8, 32], strides = [1, 1]} : vector<8x128xf32> to vector<8x32xf32>
    %500 = arith.negf %499 : vector<8x32xf32>
    %501 = math.exp %500 : vector<8x32xf32>
    %cst_104 = arith.constant 1.000000e+00 : f32
    %502 = vector.broadcast %cst_104 : f32 to vector<8x32xf32>
    %503 = arith.addf %502, %501 : vector<8x32xf32>
    %504 = arith.divf %502, %503 : vector<8x32xf32>
    %505 = arith.mulf %496, %422 : vector<8x32xf32>
    %506 = arith.mulf %490, %498 : vector<8x32xf32>
    %507 = arith.addf %505, %506 : vector<8x32xf32>
    %508 = math.tanh %507 : vector<8x32xf32>
    %509 = arith.mulf %504, %508 : vector<8x32xf32>
    %510 = vector.broadcast %c5_i32 : i32 to vector<8x1xi32>
    %511 = arith.cmpi slt, %510, %0 : vector<8x1xi32>
    %512 = vector.shape_cast %511 : vector<8x1xi1> to vector<8x1xi1>
    %513 = vector.broadcast %512 : vector<8x1xi1> to vector<8x32xi1>
    %514 = arith.select %513, %509, %419 : vector<8x32xi1>, vector<8x32xf32>
    %515 = vector.shape_cast %511 : vector<8x1xi1> to vector<8x1xi1>
    %516 = vector.broadcast %515 : vector<8x1xi1> to vector<8x32xi1>
    %517 = arith.select %516, %507, %422 : vector<8x32xi1>, vector<8x32xf32>
    %cst_105 = arith.constant 0.000000e+00 : f32
    %518 = vector.shape_cast %511 : vector<8x1xi1> to vector<8x1xi1>
    %519 = vector.broadcast %518 : vector<8x1xi1> to vector<8x32xi1>
    %520 = vector.broadcast %cst_105 : f32 to vector<8x32xf32>
    %521 = arith.select %519, %509, %520 : vector<8x32xi1>, vector<8x32xf32>
    %522 = arith.index_cast %c5_i32 : i32 to index
    %c0_106 = arith.constant 0 : index
    %c0_107 = arith.constant 0 : index
    %523 = vector.load %arg4[%522, %c0_106, %c0_107] : memref<8x8x32xf32, #tpu.memory_space<vmem>>, vector<1x8x32xf32>
    %524 = vector.shape_cast %523 : vector<1x8x32xf32> to vector<8x32xf32>
    %525 = vector.shape_cast %521 : vector<8x32xf32> to vector<1x8x32xf32>
    tpu.vector_store %arg4[%522, %c0_106, %c0_107], %525 {strides = array<i32>} : memref<8x8x32xf32, #tpu.memory_space<vmem>>, vector<1x8x32xf32>,
    %c7_i32_108 = arith.constant 7 : i32
    %526 = arith.subi %c7_i32_108, %c5_i32 : i32
    %527 = arith.index_cast %526 : i32 to index
    %c0_109 = arith.constant 0 : index
    %c0_110 = arith.constant 0 : index
    %528 = vector.load %arg1[%527, %c0_109, %c0_110] : memref<8x8x256xf32, #tpu.memory_space<vmem>>, vector<1x8x256xf32>
    %529 = vector.shape_cast %528 : vector<1x8x256xf32> to vector<8x256xf32>
    %530 = vector.extract_strided_slice %529 {offsets = [0, 128], sizes = [8, 128], strides = [1, 1]} : vector<8x256xf32> to vector<8x128xf32>
    %cst_111 = arith.constant dense<0.000000e+00> : vector<8x128xf32>
    %531 = tpu.matmul %467, %2, %cst_111 {dimension_numbers = #tpu.dot_dimension_numbers<[1], [0], [0], [1], [0, 0, 1, 1], [], []>} : vector<8x32xf32>, vector<32x128xf32>, vector<8x128xf32> -> vector<8x128xf32>
    %532 = arith.addf %530, %531 : vector<8x128xf32>
    %533 = vector.extract_strided_slice %532 {offsets = [0, 0], sizes = [8, 32], strides = [1, 1]} : vector<8x128xf32> to vector<8x32xf32>
    %534 = arith.negf %533 : vector<8x32xf32>
    %535 = math.exp %534 : vector<8x32xf32>
    %cst_112 = arith.constant 1.000000e+00 : f32
    %536 = vector.broadcast %cst_112 : f32 to vector<8x32xf32>
    %537 = arith.addf %536, %535 : vector<8x32xf32>
    %538 = arith.divf %536, %537 : vector<8x32xf32>
    %539 = vector.extract_strided_slice %532 {offsets = [0, 32], sizes = [8, 32], strides = [1, 1]} : vector<8x128xf32> to vector<8x32xf32>
    %540 = arith.negf %539 : vector<8x32xf32>
    %541 = math.exp %540 : vector<8x32xf32>
    %cst_113 = arith.constant 1.000000e+00 : f32
    %542 = vector.broadcast %cst_113 : f32 to vector<8x32xf32>
    %543 = arith.addf %542, %541 : vector<8x32xf32>
    %544 = arith.divf %542, %543 : vector<8x32xf32>
    %545 = vector.extract_strided_slice %532 {offsets = [0, 64], sizes = [8, 32], strides = [1, 1]} : vector<8x128xf32> to vector<8x32xf32>
    %546 = math.tanh %545 : vector<8x32xf32>
    %547 = vector.extract_strided_slice %532 {offsets = [0, 96], sizes = [8, 32], strides = [1, 1]} : vector<8x128xf32> to vector<8x32xf32>
    %548 = arith.negf %547 : vector<8x32xf32>
    %549 = math.exp %548 : vector<8x32xf32>
    %cst_114 = arith.constant 1.000000e+00 : f32
    %550 = vector.broadcast %cst_114 : f32 to vector<8x32xf32>
    %551 = arith.addf %550, %549 : vector<8x32xf32>
    %552 = arith.divf %550, %551 : vector<8x32xf32>
    %553 = arith.mulf %544, %470 : vector<8x32xf32>
    %554 = arith.mulf %538, %546 : vector<8x32xf32>
    %555 = arith.addf %553, %554 : vector<8x32xf32>
    %556 = math.tanh %555 : vector<8x32xf32>
    %557 = arith.mulf %552, %556 : vector<8x32xf32>
    %558 = vector.broadcast %526 : i32 to vector<8x1xi32>
    %559 = arith.cmpi slt, %558, %0 : vector<8x1xi32>
    %560 = vector.shape_cast %559 : vector<8x1xi1> to vector<8x1xi1>
    %561 = vector.broadcast %560 : vector<8x1xi1> to vector<8x32xi1>
    %562 = arith.select %561, %557, %467 : vector<8x32xi1>, vector<8x32xf32>
    %563 = vector.shape_cast %559 : vector<8x1xi1> to vector<8x1xi1>
    %564 = vector.broadcast %563 : vector<8x1xi1> to vector<8x32xi1>
    %565 = arith.select %564, %555, %470 : vector<8x32xi1>, vector<8x32xf32>
    %cst_115 = arith.constant 0.000000e+00 : f32
    %566 = vector.shape_cast %559 : vector<8x1xi1> to vector<8x1xi1>
    %567 = vector.broadcast %566 : vector<8x1xi1> to vector<8x32xi1>
    %568 = vector.broadcast %cst_115 : f32 to vector<8x32xf32>
    %569 = arith.select %567, %557, %568 : vector<8x32xi1>, vector<8x32xf32>
    %570 = arith.index_cast %526 : i32 to index
    %c0_116 = arith.constant 0 : index
    %c0_117 = arith.constant 0 : index
    %571 = vector.load %arg5[%570, %c0_116, %c0_117] : memref<8x8x32xf32, #tpu.memory_space<vmem>>, vector<1x8x32xf32>
    %572 = vector.shape_cast %571 : vector<1x8x32xf32> to vector<8x32xf32>
    %573 = vector.shape_cast %569 : vector<8x32xf32> to vector<1x8x32xf32>
    tpu.vector_store %arg5[%570, %c0_116, %c0_117], %573 {strides = array<i32>} : memref<8x8x32xf32, #tpu.memory_space<vmem>>, vector<1x8x32xf32>,
    %c6_i32 = arith.constant 6 : i32
    %574 = arith.index_cast %c6_i32 : i32 to index
    %c0_118 = arith.constant 0 : index
    %c0_119 = arith.constant 0 : index
    %575 = vector.load %arg1[%574, %c0_118, %c0_119] : memref<8x8x256xf32, #tpu.memory_space<vmem>>, vector<1x8x256xf32>
    %576 = vector.shape_cast %575 : vector<1x8x256xf32> to vector<8x256xf32>
    %577 = vector.extract_strided_slice %576 {offsets = [0, 0], sizes = [8, 128], strides = [1, 1]} : vector<8x256xf32> to vector<8x128xf32>
    %cst_120 = arith.constant dense<0.000000e+00> : vector<8x128xf32>
    %578 = tpu.matmul %514, %1, %cst_120 {dimension_numbers = #tpu.dot_dimension_numbers<[1], [0], [0], [1], [0, 0, 1, 1], [], []>} : vector<8x32xf32>, vector<32x128xf32>, vector<8x128xf32> -> vector<8x128xf32>
    %579 = arith.addf %577, %578 : vector<8x128xf32>
    %580 = vector.extract_strided_slice %579 {offsets = [0, 0], sizes = [8, 32], strides = [1, 1]} : vector<8x128xf32> to vector<8x32xf32>
    %581 = arith.negf %580 : vector<8x32xf32>
    %582 = math.exp %581 : vector<8x32xf32>
    %cst_121 = arith.constant 1.000000e+00 : f32
    %583 = vector.broadcast %cst_121 : f32 to vector<8x32xf32>
    %584 = arith.addf %583, %582 : vector<8x32xf32>
    %585 = arith.divf %583, %584 : vector<8x32xf32>
    %586 = vector.extract_strided_slice %579 {offsets = [0, 32], sizes = [8, 32], strides = [1, 1]} : vector<8x128xf32> to vector<8x32xf32>
    %587 = arith.negf %586 : vector<8x32xf32>
    %588 = math.exp %587 : vector<8x32xf32>
    %cst_122 = arith.constant 1.000000e+00 : f32
    %589 = vector.broadcast %cst_122 : f32 to vector<8x32xf32>
    %590 = arith.addf %589, %588 : vector<8x32xf32>
    %591 = arith.divf %589, %590 : vector<8x32xf32>
    %592 = vector.extract_strided_slice %579 {offsets = [0, 64], sizes = [8, 32], strides = [1, 1]} : vector<8x128xf32> to vector<8x32xf32>
    %593 = math.tanh %592 : vector<8x32xf32>
    %594 = vector.extract_strided_slice %579 {offsets = [0, 96], sizes = [8, 32], strides = [1, 1]} : vector<8x128xf32> to vector<8x32xf32>
    %595 = arith.negf %594 : vector<8x32xf32>
    %596 = math.exp %595 : vector<8x32xf32>
    %cst_123 = arith.constant 1.000000e+00 : f32
    %597 = vector.broadcast %cst_123 : f32 to vector<8x32xf32>
    %598 = arith.addf %597, %596 : vector<8x32xf32>
    %599 = arith.divf %597, %598 : vector<8x32xf32>
    %600 = arith.mulf %591, %517 : vector<8x32xf32>
    %601 = arith.mulf %585, %593 : vector<8x32xf32>
    %602 = arith.addf %600, %601 : vector<8x32xf32>
    %603 = math.tanh %602 : vector<8x32xf32>
    %604 = arith.mulf %599, %603 : vector<8x32xf32>
    %605 = vector.broadcast %c6_i32 : i32 to vector<8x1xi32>
    %606 = arith.cmpi slt, %605, %0 : vector<8x1xi32>
    %607 = vector.shape_cast %606 : vector<8x1xi1> to vector<8x1xi1>
    %608 = vector.broadcast %607 : vector<8x1xi1> to vector<8x32xi1>
    %609 = arith.select %608, %604, %514 : vector<8x32xi1>, vector<8x32xf32>
    %610 = vector.shape_cast %606 : vector<8x1xi1> to vector<8x1xi1>
    %611 = vector.broadcast %610 : vector<8x1xi1> to vector<8x32xi1>
    %612 = arith.select %611, %602, %517 : vector<8x32xi1>, vector<8x32xf32>
    %cst_124 = arith.constant 0.000000e+00 : f32
    %613 = vector.shape_cast %606 : vector<8x1xi1> to vector<8x1xi1>
    %614 = vector.broadcast %613 : vector<8x1xi1> to vector<8x32xi1>
    %615 = vector.broadcast %cst_124 : f32 to vector<8x32xf32>
    %616 = arith.select %614, %604, %615 : vector<8x32xi1>, vector<8x32xf32>
    %617 = arith.index_cast %c6_i32 : i32 to index
    %c0_125 = arith.constant 0 : index
    %c0_126 = arith.constant 0 : index
    %618 = vector.load %arg4[%617, %c0_125, %c0_126] : memref<8x8x32xf32, #tpu.memory_space<vmem>>, vector<1x8x32xf32>
    %619 = vector.shape_cast %618 : vector<1x8x32xf32> to vector<8x32xf32>
    %620 = vector.shape_cast %616 : vector<8x32xf32> to vector<1x8x32xf32>
    tpu.vector_store %arg4[%617, %c0_125, %c0_126], %620 {strides = array<i32>} : memref<8x8x32xf32, #tpu.memory_space<vmem>>, vector<1x8x32xf32>,
    %c7_i32_127 = arith.constant 7 : i32
    %621 = arith.subi %c7_i32_127, %c6_i32 : i32
    %622 = arith.index_cast %621 : i32 to index
    %c0_128 = arith.constant 0 : index
    %c0_129 = arith.constant 0 : index
    %623 = vector.load %arg1[%622, %c0_128, %c0_129] : memref<8x8x256xf32, #tpu.memory_space<vmem>>, vector<1x8x256xf32>
    %624 = vector.shape_cast %623 : vector<1x8x256xf32> to vector<8x256xf32>
    %625 = vector.extract_strided_slice %624 {offsets = [0, 128], sizes = [8, 128], strides = [1, 1]} : vector<8x256xf32> to vector<8x128xf32>
    %cst_130 = arith.constant dense<0.000000e+00> : vector<8x128xf32>
    %626 = tpu.matmul %562, %2, %cst_130 {dimension_numbers = #tpu.dot_dimension_numbers<[1], [0], [0], [1], [0, 0, 1, 1], [], []>} : vector<8x32xf32>, vector<32x128xf32>, vector<8x128xf32> -> vector<8x128xf32>
    %627 = arith.addf %625, %626 : vector<8x128xf32>
    %628 = vector.extract_strided_slice %627 {offsets = [0, 0], sizes = [8, 32], strides = [1, 1]} : vector<8x128xf32> to vector<8x32xf32>
    %629 = arith.negf %628 : vector<8x32xf32>
    %630 = math.exp %629 : vector<8x32xf32>
    %cst_131 = arith.constant 1.000000e+00 : f32
    %631 = vector.broadcast %cst_131 : f32 to vector<8x32xf32>
    %632 = arith.addf %631, %630 : vector<8x32xf32>
    %633 = arith.divf %631, %632 : vector<8x32xf32>
    %634 = vector.extract_strided_slice %627 {offsets = [0, 32], sizes = [8, 32], strides = [1, 1]} : vector<8x128xf32> to vector<8x32xf32>
    %635 = arith.negf %634 : vector<8x32xf32>
    %636 = math.exp %635 : vector<8x32xf32>
    %cst_132 = arith.constant 1.000000e+00 : f32
    %637 = vector.broadcast %cst_132 : f32 to vector<8x32xf32>
    %638 = arith.addf %637, %636 : vector<8x32xf32>
    %639 = arith.divf %637, %638 : vector<8x32xf32>
    %640 = vector.extract_strided_slice %627 {offsets = [0, 64], sizes = [8, 32], strides = [1, 1]} : vector<8x128xf32> to vector<8x32xf32>
    %641 = math.tanh %640 : vector<8x32xf32>
    %642 = vector.extract_strided_slice %627 {offsets = [0, 96], sizes = [8, 32], strides = [1, 1]} : vector<8x128xf32> to vector<8x32xf32>
    %643 = arith.negf %642 : vector<8x32xf32>
    %644 = math.exp %643 : vector<8x32xf32>
    %cst_133 = arith.constant 1.000000e+00 : f32
    %645 = vector.broadcast %cst_133 : f32 to vector<8x32xf32>
    %646 = arith.addf %645, %644 : vector<8x32xf32>
    %647 = arith.divf %645, %646 : vector<8x32xf32>
    %648 = arith.mulf %639, %565 : vector<8x32xf32>
    %649 = arith.mulf %633, %641 : vector<8x32xf32>
    %650 = arith.addf %648, %649 : vector<8x32xf32>
    %651 = math.tanh %650 : vector<8x32xf32>
    %652 = arith.mulf %647, %651 : vector<8x32xf32>
    %653 = vector.broadcast %621 : i32 to vector<8x1xi32>
    %654 = arith.cmpi slt, %653, %0 : vector<8x1xi32>
    %655 = vector.shape_cast %654 : vector<8x1xi1> to vector<8x1xi1>
    %656 = vector.broadcast %655 : vector<8x1xi1> to vector<8x32xi1>
    %657 = arith.select %656, %652, %562 : vector<8x32xi1>, vector<8x32xf32>
    %658 = vector.shape_cast %654 : vector<8x1xi1> to vector<8x1xi1>
    %659 = vector.broadcast %658 : vector<8x1xi1> to vector<8x32xi1>
    %660 = arith.select %659, %650, %565 : vector<8x32xi1>, vector<8x32xf32>
    %cst_134 = arith.constant 0.000000e+00 : f32
    %661 = vector.shape_cast %654 : vector<8x1xi1> to vector<8x1xi1>
    %662 = vector.broadcast %661 : vector<8x1xi1> to vector<8x32xi1>
    %663 = vector.broadcast %cst_134 : f32 to vector<8x32xf32>
    %664 = arith.select %662, %652, %663 : vector<8x32xi1>, vector<8x32xf32>
    %665 = arith.index_cast %621 : i32 to index
    %c0_135 = arith.constant 0 : index
    %c0_136 = arith.constant 0 : index
    %666 = vector.load %arg5[%665, %c0_135, %c0_136] : memref<8x8x32xf32, #tpu.memory_space<vmem>>, vector<1x8x32xf32>
    %667 = vector.shape_cast %666 : vector<1x8x32xf32> to vector<8x32xf32>
    %668 = vector.shape_cast %664 : vector<8x32xf32> to vector<1x8x32xf32>
    tpu.vector_store %arg5[%665, %c0_135, %c0_136], %668 {strides = array<i32>} : memref<8x8x32xf32, #tpu.memory_space<vmem>>, vector<1x8x32xf32>,
    %c7_i32_137 = arith.constant 7 : i32
    %669 = arith.index_cast %c7_i32_137 : i32 to index
    %c0_138 = arith.constant 0 : index
    %c0_139 = arith.constant 0 : index
    %670 = vector.load %arg1[%669, %c0_138, %c0_139] : memref<8x8x256xf32, #tpu.memory_space<vmem>>, vector<1x8x256xf32>
    %671 = vector.shape_cast %670 : vector<1x8x256xf32> to vector<8x256xf32>
    %672 = vector.extract_strided_slice %671 {offsets = [0, 0], sizes = [8, 128], strides = [1, 1]} : vector<8x256xf32> to vector<8x128xf32>
    %cst_140 = arith.constant dense<0.000000e+00> : vector<8x128xf32>
    %673 = tpu.matmul %609, %1, %cst_140 {dimension_numbers = #tpu.dot_dimension_numbers<[1], [0], [0], [1], [0, 0, 1, 1], [], []>} : vector<8x32xf32>, vector<32x128xf32>, vector<8x128xf32> -> vector<8x128xf32>
    %674 = arith.addf %672, %673 : vector<8x128xf32>
    %675 = vector.extract_strided_slice %674 {offsets = [0, 0], sizes = [8, 32], strides = [1, 1]} : vector<8x128xf32> to vector<8x32xf32>
    %676 = arith.negf %675 : vector<8x32xf32>
    %677 = math.exp %676 : vector<8x32xf32>
    %cst_141 = arith.constant 1.000000e+00 : f32
    %678 = vector.broadcast %cst_141 : f32 to vector<8x32xf32>
    %679 = arith.addf %678, %677 : vector<8x32xf32>
    %680 = arith.divf %678, %679 : vector<8x32xf32>
    %681 = vector.extract_strided_slice %674 {offsets = [0, 32], sizes = [8, 32], strides = [1, 1]} : vector<8x128xf32> to vector<8x32xf32>
    %682 = arith.negf %681 : vector<8x32xf32>
    %683 = math.exp %682 : vector<8x32xf32>
    %cst_142 = arith.constant 1.000000e+00 : f32
    %684 = vector.broadcast %cst_142 : f32 to vector<8x32xf32>
    %685 = arith.addf %684, %683 : vector<8x32xf32>
    %686 = arith.divf %684, %685 : vector<8x32xf32>
    %687 = vector.extract_strided_slice %674 {offsets = [0, 64], sizes = [8, 32], strides = [1, 1]} : vector<8x128xf32> to vector<8x32xf32>
    %688 = math.tanh %687 : vector<8x32xf32>
    %689 = vector.extract_strided_slice %674 {offsets = [0, 96], sizes = [8, 32], strides = [1, 1]} : vector<8x128xf32> to vector<8x32xf32>
    %690 = arith.negf %689 : vector<8x32xf32>
    %691 = math.exp %690 : vector<8x32xf32>
    %cst_143 = arith.constant 1.000000e+00 : f32
    %692 = vector.broadcast %cst_143 : f32 to vector<8x32xf32>
    %693 = arith.addf %692, %691 : vector<8x32xf32>
    %694 = arith.divf %692, %693 : vector<8x32xf32>
    %695 = arith.mulf %686, %612 : vector<8x32xf32>
    %696 = arith.mulf %680, %688 : vector<8x32xf32>
    %697 = arith.addf %695, %696 : vector<8x32xf32>
    %698 = math.tanh %697 : vector<8x32xf32>
    %699 = arith.mulf %694, %698 : vector<8x32xf32>
    %700 = vector.broadcast %c7_i32_137 : i32 to vector<8x1xi32>
    %701 = arith.cmpi slt, %700, %0 : vector<8x1xi32>
    %702 = vector.shape_cast %701 : vector<8x1xi1> to vector<8x1xi1>
    %703 = vector.broadcast %702 : vector<8x1xi1> to vector<8x32xi1>
    %704 = arith.select %703, %699, %609 : vector<8x32xi1>, vector<8x32xf32>
    %705 = vector.shape_cast %701 : vector<8x1xi1> to vector<8x1xi1>
    %706 = vector.broadcast %705 : vector<8x1xi1> to vector<8x32xi1>
    %707 = arith.select %706, %697, %612 : vector<8x32xi1>, vector<8x32xf32>
    %cst_144 = arith.constant 0.000000e+00 : f32
    %708 = vector.shape_cast %701 : vector<8x1xi1> to vector<8x1xi1>
    %709 = vector.broadcast %708 : vector<8x1xi1> to vector<8x32xi1>
    %710 = vector.broadcast %cst_144 : f32 to vector<8x32xf32>
    %711 = arith.select %709, %699, %710 : vector<8x32xi1>, vector<8x32xf32>
    %712 = arith.index_cast %c7_i32_137 : i32 to index
    %c0_145 = arith.constant 0 : index
    %c0_146 = arith.constant 0 : index
    %713 = vector.load %arg4[%712, %c0_145, %c0_146] : memref<8x8x32xf32, #tpu.memory_space<vmem>>, vector<1x8x32xf32>
    %714 = vector.shape_cast %713 : vector<1x8x32xf32> to vector<8x32xf32>
    %715 = vector.shape_cast %711 : vector<8x32xf32> to vector<1x8x32xf32>
    tpu.vector_store %arg4[%712, %c0_145, %c0_146], %715 {strides = array<i32>} : memref<8x8x32xf32, #tpu.memory_space<vmem>>, vector<1x8x32xf32>,
    %c7_i32_147 = arith.constant 7 : i32
    %716 = arith.subi %c7_i32_147, %c7_i32_137 : i32
    %717 = arith.index_cast %716 : i32 to index
    %c0_148 = arith.constant 0 : index
    %c0_149 = arith.constant 0 : index
    %718 = vector.load %arg1[%717, %c0_148, %c0_149] : memref<8x8x256xf32, #tpu.memory_space<vmem>>, vector<1x8x256xf32>
    %719 = vector.shape_cast %718 : vector<1x8x256xf32> to vector<8x256xf32>
    %720 = vector.extract_strided_slice %719 {offsets = [0, 128], sizes = [8, 128], strides = [1, 1]} : vector<8x256xf32> to vector<8x128xf32>
    %cst_150 = arith.constant dense<0.000000e+00> : vector<8x128xf32>
    %721 = tpu.matmul %657, %2, %cst_150 {dimension_numbers = #tpu.dot_dimension_numbers<[1], [0], [0], [1], [0, 0, 1, 1], [], []>} : vector<8x32xf32>, vector<32x128xf32>, vector<8x128xf32> -> vector<8x128xf32>
    %722 = arith.addf %720, %721 : vector<8x128xf32>
    %723 = vector.extract_strided_slice %722 {offsets = [0, 0], sizes = [8, 32], strides = [1, 1]} : vector<8x128xf32> to vector<8x32xf32>
    %724 = arith.negf %723 : vector<8x32xf32>
    %725 = math.exp %724 : vector<8x32xf32>
    %cst_151 = arith.constant 1.000000e+00 : f32
    %726 = vector.broadcast %cst_151 : f32 to vector<8x32xf32>
    %727 = arith.addf %726, %725 : vector<8x32xf32>
    %728 = arith.divf %726, %727 : vector<8x32xf32>
    %729 = vector.extract_strided_slice %722 {offsets = [0, 32], sizes = [8, 32], strides = [1, 1]} : vector<8x128xf32> to vector<8x32xf32>
    %730 = arith.negf %729 : vector<8x32xf32>
    %731 = math.exp %730 : vector<8x32xf32>
    %cst_152 = arith.constant 1.000000e+00 : f32
    %732 = vector.broadcast %cst_152 : f32 to vector<8x32xf32>
    %733 = arith.addf %732, %731 : vector<8x32xf32>
    %734 = arith.divf %732, %733 : vector<8x32xf32>
    %735 = vector.extract_strided_slice %722 {offsets = [0, 64], sizes = [8, 32], strides = [1, 1]} : vector<8x128xf32> to vector<8x32xf32>
    %736 = math.tanh %735 : vector<8x32xf32>
    %737 = vector.extract_strided_slice %722 {offsets = [0, 96], sizes = [8, 32], strides = [1, 1]} : vector<8x128xf32> to vector<8x32xf32>
    %738 = arith.negf %737 : vector<8x32xf32>
    %739 = math.exp %738 : vector<8x32xf32>
    %cst_153 = arith.constant 1.000000e+00 : f32
    %740 = vector.broadcast %cst_153 : f32 to vector<8x32xf32>
    %741 = arith.addf %740, %739 : vector<8x32xf32>
    %742 = arith.divf %740, %741 : vector<8x32xf32>
    %743 = arith.mulf %734, %660 : vector<8x32xf32>
    %744 = arith.mulf %728, %736 : vector<8x32xf32>
    %745 = arith.addf %743, %744 : vector<8x32xf32>
    %746 = math.tanh %745 : vector<8x32xf32>
    %747 = arith.mulf %742, %746 : vector<8x32xf32>
    %748 = vector.broadcast %716 : i32 to vector<8x1xi32>
    %749 = arith.cmpi slt, %748, %0 : vector<8x1xi32>
    %750 = vector.shape_cast %749 : vector<8x1xi1> to vector<8x1xi1>
    %751 = vector.broadcast %750 : vector<8x1xi1> to vector<8x32xi1>
    %752 = arith.select %751, %747, %657 : vector<8x32xi1>, vector<8x32xf32>
    %753 = vector.shape_cast %749 : vector<8x1xi1> to vector<8x1xi1>
    %754 = vector.broadcast %753 : vector<8x1xi1> to vector<8x32xi1>
    %755 = arith.select %754, %745, %660 : vector<8x32xi1>, vector<8x32xf32>
    %cst_154 = arith.constant 0.000000e+00 : f32
    %756 = vector.shape_cast %749 : vector<8x1xi1> to vector<8x1xi1>
    %757 = vector.broadcast %756 : vector<8x1xi1> to vector<8x32xi1>
    %758 = vector.broadcast %cst_154 : f32 to vector<8x32xf32>
    %759 = arith.select %757, %747, %758 : vector<8x32xi1>, vector<8x32xf32>
    %760 = arith.index_cast %716 : i32 to index
    %c0_155 = arith.constant 0 : index
    %c0_156 = arith.constant 0 : index
    %761 = vector.load %arg5[%760, %c0_155, %c0_156] : memref<8x8x32xf32, #tpu.memory_space<vmem>>, vector<1x8x32xf32>
    %762 = vector.shape_cast %761 : vector<1x8x32xf32> to vector<8x32xf32>
    %763 = vector.shape_cast %759 : vector<8x32xf32> to vector<1x8x32xf32>
    tpu.vector_store %arg5[%760, %c0_155, %c0_156], %763 {strides = array<i32>} : memref<8x8x32xf32, #tpu.memory_space<vmem>>, vector<1x8x32xf32>,
    %c8_i32 = arith.constant 8 : i32
    %c0_157 = arith.constant 0 : index
    %c0_158 = arith.constant 0 : index
    %c0_159 = arith.constant 0 : index
    %764 = vector.load %arg6[%c0_157, %c0_158, %c0_159] : memref<2x8x32xf32, #tpu.memory_space<vmem>>, vector<1x8x32xf32>
    %765 = vector.shape_cast %764 : vector<1x8x32xf32> to vector<8x32xf32>
    %766 = vector.shape_cast %704 : vector<8x32xf32> to vector<1x8x32xf32>
    tpu.vector_store %arg6[%c0_157, %c0_158, %c0_159], %766 {strides = array<i32>} : memref<2x8x32xf32, #tpu.memory_space<vmem>>, vector<1x8x32xf32>,
    %c1 = arith.constant 1 : index
    %c0_160 = arith.constant 0 : index
    %c0_161 = arith.constant 0 : index
    %767 = vector.load %arg6[%c1, %c0_160, %c0_161] : memref<2x8x32xf32, #tpu.memory_space<vmem>>, vector<1x8x32xf32>
    %768 = vector.shape_cast %767 : vector<1x8x32xf32> to vector<8x32xf32>
    %769 = vector.shape_cast %752 : vector<8x32xf32> to vector<1x8x32xf32>
    tpu.vector_store %arg6[%c1, %c0_160, %c0_161], %769 {strides = array<i32>} : memref<2x8x32xf32, #tpu.memory_space<vmem>>, vector<1x8x32xf32>,
    %c0_162 = arith.constant 0 : index
    %c0_163 = arith.constant 0 : index
    %c0_164 = arith.constant 0 : index
    %770 = vector.load %arg7[%c0_162, %c0_163, %c0_164] : memref<2x8x32xf32, #tpu.memory_space<vmem>>, vector<1x8x32xf32>
    %771 = vector.shape_cast %770 : vector<1x8x32xf32> to vector<8x32xf32>
    %772 = vector.shape_cast %707 : vector<8x32xf32> to vector<1x8x32xf32>
    tpu.vector_store %arg7[%c0_162, %c0_163, %c0_164], %772 {strides = array<i32>} : memref<2x8x32xf32, #tpu.memory_space<vmem>>, vector<1x8x32xf32>,
    %c1_165 = arith.constant 1 : index
    %c0_166 = arith.constant 0 : index
    %c0_167 = arith.constant 0 : index
    %773 = vector.load %arg7[%c1_165, %c0_166, %c0_167] : memref<2x8x32xf32, #tpu.memory_space<vmem>>, vector<1x8x32xf32>
    %774 = vector.shape_cast %773 : vector<1x8x32xf32> to vector<8x32xf32>
    %775 = vector.shape_cast %755 : vector<8x32xf32> to vector<1x8x32xf32>
    tpu.vector_store %arg7[%c1_165, %c0_166, %c0_167], %775 {strides = array<i32>} : memref<2x8x32xf32, #tpu.memory_space<vmem>>, vector<1x8x32xf32>,
    return
  }
}

</mosaic_0001>

<bundles_post_ra>
// kernel: encoder_forward.1
= control target key start
LH: loop header
LB: loop body
LE: loop exit
PB: predicated region body
PF: predicated region fallthrough
CT: control target
= control target key end

     0   :  { %v1471_v8 = vmov 0.0   ;;  %s1472_s19 = smov 64   ;;  %v1473_v21 = vmov 0   ;;  %vm31_vm12 = vcmask 261120   ;;  %s1475_s15 = smov 96   ;;  %s2202_s2 = inlined_call_operand.vmem [shape: f32[32,128], index: 2, kind: input, shape index: {}]   ;;  %s2203_s3 = inlined_call_operand.vmem [shape: f32[32,128], index: 3, kind: input, shape index: {}]   ;;  %s2204_s1 = inlined_call_operand.vmem [shape: f32[8,8,256], index: 1, kind: input, shape index: {}]   ;;  %s2205_s0 = inlined_call_operand.vmem [shape: s32[8,1], index: 0, kind: input, shape index: {}]   ;;  %s2206_s4 = inlined_call_operand.vmem [shape: f32[8,8,32], index: 4, kind: output, shape index: {0}]   ;;  %s2207_s5 = inlined_call_operand.vmem [shape: f32[8,8,32], index: 5, kind: output, shape index: {1}]   ;;  %s2208_s6 = inlined_call_operand.vmem [shape: f32[2,8,32], index: 6, kind: output, shape index: {2}]   ;;  %s2209_s7 = inlined_call_operand.vmem [shape: f32[2,8,32], index: 7, kind: output, shape index: {3}]  }
   0x1   :  { %v1519_v0 = vld [vmem:[%s2202_s2 + $0x18] sm:$0xff]  ;;  %v1529_v2 = vld [vmem:[%s2202_s2 + $0x10] sm:$0xff]  ;;  %v1541_v4 = vld [vmem:[%s2202_s2 + $0x8] sm:$0xff]  ;;  %1340 = vset.pattern.permute.xlu0 %v1473_v21  ;;  %1341 = vset.pattern.permute.xlu1 %v1473_v21 }
   0x2   :  { %v1524_v1 = vld [vmem:[%s2203_s3 + $0x18] sm:$0xff]  ;;  %47 = vmatpush.msra.mxu0 %v1519_v0  ;;  %v1536_v3 = vld [vmem:[%s2203_s3 + $0x10] sm:$0xff]  ;;  %v1546_v5 = vld [vmem:[%s2203_s3 + $0x8] sm:$0xff]  ;;  %196 = vmatpush.msra.mxu2 %v1519_v0 }
   0x3   :  { %120 = vmatpush.msra.mxu1 %v1524_v1  ;;  %273 = vmatpush.msra.mxu3 %v1524_v1  ;;  %v1555_v6 = vld [vmem:[%s2202_s2] sm:$0xff]  ;;  %v1276_v12 = vld [vmem:[%s2204_s1 + $0x78] sm:$0xff] }
   0x4   :  { %48 = vmatpush.msra.mxu0 %v1529_v2  ;;  %v1560_v7 = vld [vmem:[%s2203_s3] sm:$0xff]  ;;  %197 = vmatpush.msra.mxu2 %v1529_v2 }
   0x5   :  { %121 = vmatpush.msra.mxu1 %v1536_v3  ;;  %274 = vmatpush.msra.mxu3 %v1536_v3  ;;  %v30_v9 = vld [vmem:[%s2204_s1] sm:$0xff] }
   0x6   :  { %49 = vmatpush.msra.mxu0 %v1541_v4  ;;  %198 = vmatpush.msra.mxu2 %v1541_v4  ;;  %v1608_v22 = vld [vmem:[%s2205_s0] sm:$0xff]  ;;  %s1474_s0 = smov 32  }
   0x7   :  { %122 = vmatpush.msra.mxu1 %v1546_v5  ;;  %275 = vmatpush.msra.mxu3 %v1546_v5  ;;  %vm93_vm0 = vcmp.gt.s32.totalorder %v1608_v22, 0  ;;  %vm166_vm9 = vcmp.gt.s32.totalorder %v1608_v22, 7 }
   0x8   :  { %50 = vmatpush.msra.mxu0 %v1555_v6  ;;  %199 = vmatpush.msra.mxu2 %v1555_v6  ;;  %v94_v23 = vsel %vm93_vm0, 1, %v1473_v21  ;;  %v167_v50 = vsel %vm166_vm9, 1, %v1473_v21 }
   0x9   :  { %123 = vmatpush.msra.mxu1 %v1560_v7  ;;  %51 = vmatmul.f32.vlgmr.msra.gmra.mxu0 %v1471_v8 }
   0xa   :  { %124 = vmatmul.f32.vlgmr.msra.gmra.mxu1 %v1471_v8  ;;  %276 = vmatpush.msra.mxu3 %v1560_v7 }
   0xb   :  { %353 = vmatpush.msrb.mxu0 %v1519_v0  ;;  %433 = vmatpush.msrb.mxu1 %v1524_v1 }
   0xc   :  { %513 = vmatpush.msrb.mxu2 %v1519_v0  ;;  %593 = vmatpush.msrb.mxu3 %v1524_v1 }
   0xd   :  { %354 = vmatpush.msrb.mxu0 %v1529_v2  ;;  %434 = vmatpush.msrb.mxu1 %v1536_v3 }
   0xe   :  { %514 = vmatpush.msrb.mxu2 %v1529_v2  ;;  %594 = vmatpush.msrb.mxu3 %v1536_v3 }
   0xf   :  { %355 = vmatpush.msrb.mxu0 %v1541_v4  ;;  %435 = vmatpush.msrb.mxu1 %v1546_v5 }
  0x10   :  { %515 = vmatpush.msrb.mxu2 %v1541_v4  ;;  %595 = vmatpush.msrb.mxu3 %v1546_v5 }
  0x11   :  { %356 = vmatpush.msrb.mxu0 %v1555_v6  ;;  %436 = vmatpush.msrb.mxu1 %v1560_v7 }
  0x12   :  { %516 = vmatpush.msrb.mxu2 %v1555_v6  ;;  %596 = vmatpush.msrb.mxu3 %v1560_v7 }
  0x13   :  { %672 = vmatpush.msra.mxu0 %v1519_v0  ;;  %745 = vmatpush.msra.mxu1 %v1524_v1 }
  0x14   :  { %1342 = vset.pattern.permute.xlu2 %v1473_v21 }
  0x15   :  { %673 = vmatpush.msra.mxu0 %v1529_v2  ;;  %746 = vmatpush.msra.mxu1 %v1536_v3 }
  0x17   :  { %674 = vmatpush.msra.mxu0 %v1541_v4  ;;  %747 = vmatpush.msra.mxu1 %v1546_v5 }
  0x19   :  { %675 = vmatpush.msra.mxu0 %v1555_v6  ;;  %748 = vmatpush.msra.mxu1 %v1560_v7 }
  0x86   :  { %v52_v10 = vpop.f32.mrf.mxu0 }
  0x87   :  { %v55_v11 = vadd.f32 %v52_v10, %v30_v9  ;;  %v125_v13 = vpop.f32.mrf.mxu1 }
  0x88   :  { %v128_v14 = vadd.f32 %v1276_v12, %v125_v13  ;;  %v1279_v13 = vld [vmem:[%s2204_s1 + $0x10] sm:$0xff] }
  0x89   :  { %1343 = vtanh.f32 %v55_v11  ;;  %v1275_v17 = vmul.f32 -1.442695, %v55_v11 }
  0x8a   :  { %1345 = vtanh.f32 %v128_v14  ;;  %v1277_v18 = vmul.f32 -1.442695, %v128_v14 }
  0x8b   :  { %1347 = vpow2.f32 %v1275_v17  ;;  %v1283_v17 = vld [vmem:[%s2204_s1 + $0x68] sm:$0xff] }
  0x8c   :  { %1349 = vpow2.f32 %v1277_v18 }
  0x8f   :  { %v1344_v15 = vpop.eup %1343 }
  0x90   :  { %78 = vrot.lane.b32.xlu0 %v1344_v15, %s1472_s19  ;;  %v1346_v16 = vpop.eup %1345 }
  0x91   :  { %v1348_v19 = vpop.eup %1347 }
  0x92   :  { %v59_v20 = vadd.f32 1.0, %v1348_v19  ;;  %v1350_v24 = vpop.eup %1349 }
  0x93   :  { %v132_v25 = vadd.f32 1.0, %v1350_v24 }
  0x94   :  { %1351 = vrcp.f32 %v59_v20  ;;  %v71_v34 = vand.u32 2147483648, %v59_v20  ;;  %vm65_vm2 = vweird.f32 %v59_v20  ;;  %v69_v35 = vand.u32 2147483647, %v59_v20 }
  0x95   :  { %1353 = vrcp.f32 %v132_v25  ;;  %vm138_vm5 = vweird.f32 %v132_v25  ;;  %v144_v43 = vand.u32 2147483648, %v132_v25  ;;  %v142_v44 = vand.u32 2147483647, %v132_v25 }
  0x96   :  { %v72_v38 = vor.u32 1.1754944e-38, %v71_v34  ;;  %vm70_vm4 = vcmp.eq.f32.partialorder %v69_v35, 8.507059e+37 }
  0x97   :  { %v145_v46 = vor.u32 1.1754944e-38, %v144_v43  ;;  %vm143_vm8 = vcmp.eq.f32.partialorder %v142_v44, 8.507059e+37 }
  0x98   :  { %151 = vrot.lane.b32.xlu0 %v1346_v16, %s1472_s19 }
  0x9a   :  { %v1352_v26 = vpop.eup %1351 }
  0x9b   :  { %v61_v27 = vmul.f32 %v1352_v26, %v59_v20  ;;  %v1354_v29 = vpop.eup %1353  ;;  %vm66_vm1 = vweird.f32 %v1352_v26 }
  0x9c   :  { %v134_v31 = vmul.f32 %v1354_v29, %v132_v25  ;;  %vm67_vm3 = vmor %vm65_vm2, %vm66_vm1  ;;  %vm139_vm6 = vweird.f32 %v1354_v29 }
  0x9d   :  { %v62_v28 = vsub.f32 1.0, %v61_v27  ;;  %vm140_vm7 = vmor %vm138_vm5, %vm139_vm6  ;;  %vm242_vm5 = vcmp.gt.s32.totalorder %v1608_v22, 1  ;;  %vm319_vm6 = vcmp.gt.s32.totalorder %v1608_v22, 6 }
  0x9e   :  { %v135_v33 = vsub.f32 1.0, %v134_v31 }
  0x9f   :  { %v63_v30 = vmul.f32 %v1352_v26, %v62_v28 }
  0xa0   :  { %96 = vperm.xlu0 %1340, %v94_v23   ;;  %v136_v37 = vmul.f32 %v1354_v29, %v135_v33 }
  0xa1   :  { %v64_v32 = vadd.f32 %v1352_v26, %v63_v30 }
  0xa2   :  { %v137_v42 = vadd.f32 %v1354_v29, %v136_v37 }
  0xa3   :  { %v68_v36 = vsel %vm67_vm3, %v1352_v26, %v64_v32 }
  0xa4   :  { %v73_v40 = vsel %vm70_vm4, %v72_v38, %v68_v36  ;;  %v141_v45 = vsel %vm140_vm7, %v1354_v29, %v137_v42 }
  0xa5   :  { %v146_v47 = vsel %vm143_vm8, %v145_v46, %v141_v45  ;;  %v76_v51 = vmul.f32 0.0, %v73_v40 }
  0xa6   :  { %v149_v54 = vmul.f32 0.0, %v146_v47 }
 0x102   :  { %v79_v39 = vpop.permute.xlu0 %78 }
 0x103   :  { %v81_v41 = vmul.f32 %v79_v39, %v73_v40 }
 0x105   :  { %83 = vrot.lane.b32.xlu1 %v81_v41, %s1474_s0 }
 0x10a   :  { %v152_v48 = vpop.permute.xlu0 %151 }
 0x10b   :  { %v154_v49 = vmul.f32 %v152_v48, %v146_v47 }
 0x10d   :  { %156 = vrot.lane.b32.xlu1 %v154_v49, %s1474_s0 }
 0x112   :  { %v1626_v59 = vpop.permute.xlu0 %96 }
 0x113   :  { %vm98_vm10 = vcmp.eq.s32.totalorder %v1626_v59, 1 }
 0x115   :  { %169 = vperm.xlu1 %1341, %v167_v50  }
 0x177   :  { %v84_v52 = vpop.permute.xlu1 %83 }
 0x178   :  { %v1618_v53 = vadd.f32 %v84_v52, %v76_v51 }
 0x17a   :  { %1355 = vtanh.f32 %v1618_v53 }
 0x17f   :  { %v157_v55 = vpop.permute.xlu1 %156 }
 0x180   :  { %v1356_v56 = vpop.eup %1355  ;;  %v1621_v57 = vadd.f32 %v157_v55, %v149_v54  ;;  %v243_v54 = vsel %vm242_vm5, 1, %v1473_v21  ;;  %v1677_v55 = vsel %vm98_vm10, %v1618_v53, 0.0  ;;  %vm479_vm5 = vcmp.gt.s32.totalorder %v1608_v22, 5 }
 0x181   :  { %89 = vrot.lane.b32.xlu2 %v1356_v56, %s1472_s19 }
 0x182   :  { %1357 = vtanh.f32 %v1621_v57 }
 0x187   :  { %v1635_v63 = vpop.permute.xlu1 %169 }
 0x188   :  { %v1358_v58 = vpop.eup %1357  ;;  %vm171_vm11 = vcmp.eq.s32.totalorder %v1635_v63, 1 }
 0x189   :  { %162 = vrot.lane.b32.xlu2 %v1358_v58, %s1472_s19  ;;  %v1689_v53 = vsel %vm171_vm11, %v1621_v57, 0.0 }
 0x1db   :  { %v90_v60 = vpop.permute.xlu2 %89 }
 0x1dc   :  { %v92_v61 = vmul.f32 %v90_v60, %v73_v40 }
 0x1de   :  { %v1631_v62 = vsel %vm98_vm10, %v92_v61, 0.0 }
 0x1df   :  { %102 = vrot.lane.b32.xlu2 %v1631_v62, %s1474_s0 }
 0x1e3   :  { %v163_v8 = vpop.permute.xlu2 %162 }
 0x1e4   :  { %v165_v9 = vmul.f32 %v163_v8, %v146_v47  ;;  %v320_v8 = vsel %vm319_vm6, 1, %v1473_v21 }
 0x1e6   :  { %v1640_v10 = vsel %vm171_vm11, %v165_v9, 0.0 }
 0x1e7   :  { %175 = vrot.lane.b32.xlu1 %v1640_v10, %s1474_s0 }
 0x239   :  { %v103_v11 = vpop.permute.xlu2 %102 }
 0x23a   :  { %105 = vst.msk [vmem:[%s2206_s4] sm:$0xff] %vm31_vm12, %v103_v11  ;;  %1280 = vmatmul.msk.f32.vlgmr.msra.gmra.mxu2 %vm31_vm12, %v103_v11 }
 0x23b   :  { %818 = vmatpush.msra.mxu2 %v1519_v0 }
 0x23d   :  { %819 = vmatpush.msra.mxu2 %v1529_v2 }
 0x23f   :  { %820 = vmatpush.msra.mxu2 %v1541_v4 }
 0x241   :  { %821 = vmatpush.msra.mxu2 %v1555_v6 }
 0x259   :  { %v176_v12 = vpop.permute.xlu1 %175 }
 0x25a   :  { %1278 = vst.msk [vmem:[%s2207_s5 + $0x38] sm:$0xff] %vm31_vm12, %v176_v12  ;;  %1284 = vmatmul.msk.f32.vlgmr.msra.gmra.mxu3 %vm31_vm12, %v176_v12 }
 0x25b   :  { %891 = vmatpush.msra.mxu3 %v1524_v1 }
 0x25d   :  { %892 = vmatpush.msra.mxu3 %v1536_v3 }
 0x25f   :  { %893 = vmatpush.msra.mxu3 %v1546_v5 }
 0x261   :  { %894 = vmatpush.msra.mxu3 %v1560_v7 }
 0x2bd   :  { %v201_v14 = vpop.f32.mrf.mxu2 }
 0x2be   :  { %v204_v15 = vadd.f32 %v1279_v13, %v201_v14 }
 0x2c0   :  { %1359 = vtanh.f32 %v204_v15  ;;  %v1281_v23 = vmul.f32 -1.442695, %v204_v15 }
 0x2c6   :  { %v1360_v16 = vpop.eup %1359 }
 0x2c7   :  { %227 = vrot.lane.b32.xlu2 %v1360_v16, %s1472_s19 }
 0x2dd   :  { %v278_v18 = vpop.f32.mrf.mxu3 }
 0x2de   :  { %v281_v19 = vadd.f32 %v1283_v17, %v278_v18 }
 0x2e0   :  { %1361 = vtanh.f32 %v281_v19  ;;  %v1285_v38 = vmul.f32 -1.442695, %v281_v19 }
 0x2e1   :  { %1363 = vpow2.f32 %v1281_v23 }
 0x2e6   :  { %v1362_v20 = vpop.eup %1361 }
 0x2e7   :  { %304 = vrot.lane.b32.xlu0 %v1362_v20, %s1472_s19  ;;  %v1364_v24 = vpop.eup %1363 }
 0x2e8   :  { %v208_v25 = vadd.f32 1.0, %v1364_v24 }
 0x2ea   :  { %1365 = vrcp.f32 %v208_v25  ;;  %v220_v31 = vand.u32 2147483648, %v208_v25  ;;  %vm214_vm14 = vweird.f32 %v208_v25  ;;  %v218_v32 = vand.u32 2147483647, %v208_v25 }
 0x2eb   :  { %1367 = vpow2.f32 %v1285_v38 }
 0x2ec   :  { %v221_v34 = vor.u32 1.1754944e-38, %v220_v31  ;;  %vm219_vm0 = vcmp.eq.f32.partialorder %v218_v32, 8.507059e+37 }
 0x2f0   :  { %v1366_v26 = vpop.eup %1365 }
 0x2f1   :  { %v210_v27 = vmul.f32 %v1366_v26, %v208_v25  ;;  %vm215_vm13 = vweird.f32 %v1366_v26  ;;  %v1368_v39 = vpop.eup %1367 }
 0x2f2   :  { %vm216_vm15 = vmor %vm214_vm14, %vm215_vm13  ;;  %v285_v40 = vadd.f32 1.0, %v1368_v39 }
 0x2f3   :  { %v211_v28 = vsub.f32 1.0, %v210_v27 }
 0x2f4   :  { %1369 = vrcp.f32 %v285_v40  ;;  %v297_v46 = vand.u32 2147483648, %v285_v40  ;;  %vm291_vm2 = vweird.f32 %v285_v40  ;;  %v295_v47 = vand.u32 2147483647, %v285_v40 }
 0x2f5   :  { %v212_v29 = vmul.f32 %v1366_v26, %v211_v28 }
 0x2f6   :  { %v298_v49 = vor.u32 1.1754944e-38, %v297_v46  ;;  %vm296_vm4 = vcmp.eq.f32.partialorder %v295_v47, 8.507059e+37 }
 0x2f7   :  { %v213_v30 = vadd.f32 %v1366_v26, %v212_v29 }
 0x2f9   :  { %v217_v33 = vsel %vm216_vm15, %v1366_v26, %v213_v30  ;;  %v1291_v26 = vld [vmem:[%s2204_s1 + $0x58] sm:$0xff] }
 0x2fa   :  { %v222_v36 = vsel %vm219_vm0, %v221_v34, %v217_v33  ;;  %v1370_v41 = vpop.eup %1369 }
 0x2fb   :  { %v287_v42 = vmul.f32 %v1370_v41, %v285_v40  ;;  %vm292_vm1 = vweird.f32 %v1370_v41  ;;  %v225_v56 = vmul.f32 %v222_v36, %v1677_v55 }
 0x2fc   :  { %vm293_vm3 = vmor %vm291_vm2, %vm292_vm1 }
 0x2fd   :  { %v288_v43 = vsub.f32 1.0, %v287_v42 }
 0x2ff   :  { %v289_v44 = vmul.f32 %v1370_v41, %v288_v43 }
 0x301   :  { %v290_v45 = vadd.f32 %v1370_v41, %v289_v44 }
 0x303   :  { %v294_v48 = vsel %vm293_vm3, %v1370_v41, %v290_v45 }
 0x304   :  { %v299_v50 = vsel %vm296_vm4, %v298_v49, %v294_v48  ;;  %vm399_vm4 = vcmp.gt.s32.totalorder %v1608_v22, 2 }
 0x305   :  { %v302_v9 = vmul.f32 %v299_v50, %v1689_v53 }
 0x321   :  { %v228_v35 = vpop.permute.xlu2 %227 }
 0x322   :  { %v230_v37 = vmul.f32 %v228_v35, %v222_v36 }
 0x324   :  { %232 = vrot.lane.b32.xlu1 %v230_v37, %s1474_s0 }
 0x359   :  { %v305_v51 = vpop.permute.xlu0 %304 }
 0x35a   :  { %v307_v52 = vmul.f32 %v305_v51, %v299_v50 }
 0x35c   :  { %309 = vrot.lane.b32.xlu2 %v307_v52, %s1474_s0 }
 0x364   :  { %245 = vperm.xlu2 %1342, %v243_v54  }
 0x396   :  { %v233_v58 = vpop.permute.xlu1 %232 }
 0x397   :  { %v1680_v60 = vadd.f32 %v233_v58, %v225_v56 }
 0x399   :  { %1371 = vtanh.f32 %v1680_v60 }
 0x39f   :  { %v1372_v61 = vpop.eup %1371 }
 0x3a0   :  { %238 = vrot.lane.b32.xlu0 %v1372_v61, %s1472_s19 }
 0x3a8   :  { %322 = vperm.xlu0 %1340, %v320_v8  }
 0x3b6   :  { %v310_v11 = vpop.permute.xlu2 %309 }
 0x3b7   :  { %v1692_v12 = vadd.f32 %v310_v11, %v302_v9 }
 0x3b9   :  { %1373 = vtanh.f32 %v1692_v12 }
 0x3be   :  { %v1696_v14 = vpop.permute.xlu2 %245 }
 0x3bf   :  { %v1374_v13 = vpop.eup %1373  ;;  %vm247_vm7 = vcmp.eq.s32.totalorder %v1696_v14, 1 }
 0x3c0   :  { %315 = vrot.lane.b32.xlu1 %v1374_v13, %s1472_s19 }
 0x412   :  { %v239_v15 = vpop.permute.xlu0 %238 }
 0x413   :  { %v1698_v16 = vmul.f32 %v239_v15, %v222_v36  ;;  %v400_v15 = vsel %vm399_vm4, 1, %v1473_v21 }
 0x415   :  { %v1705_v57 = vsel %vm247_vm7, %v1698_v16, %v1631_v62 }
 0x416   :  { %337 = vrot.lane.b32.xlu1 %v1705_v57, %s1474_s0 }
 0x41a   :  { %v1709_v17 = vpop.permute.xlu0 %322 }
 0x41b   :  { %vm324_vm8 = vcmp.eq.s32.totalorder %v1709_v17, 1 }
 0x432   :  { %v316_v18 = vpop.permute.xlu1 %315 }
 0x433   :  { %v1711_v19 = vmul.f32 %v316_v18, %v299_v50  ;;  %v1748_v18 = vsel %vm247_vm7, %v1680_v60, %v1677_v55  ;;  %v1761_v55 = vsel %vm324_vm8, %v1692_v12, %v1689_v53 }
 0x435   :  { %v1718_v20 = vsel %vm324_vm8, %v1711_v19, %v1640_v10  ;;  %v1287_v10 = vld [vmem:[%s2204_s1 + $0x20] sm:$0xff] }
 0x436   :  { %417 = vrot.lane.b32.xlu2 %v1718_v20, %s1474_s0 }
 0x488   :  { %v338_v62 = vpop.permute.xlu1 %337 }
 0x489   :  { %1288 = vmatmul.msk.f32.vlgmr.msrb.gmra.mxu0 %vm31_vm12, %v338_v62 }
 0x48a   :  { %964 = vmatpush.msrb.mxu0 %v1519_v0 }
 0x48c   :  { %965 = vmatpush.msrb.mxu0 %v1529_v2 }
 0x48e   :  { %966 = vmatpush.msrb.mxu0 %v1541_v4 }
 0x490   :  { %v418_v23 = vpop.permute.xlu2 %417  ;;  %967 = vmatpush.msrb.mxu0 %v1555_v6 }
 0x491   :  { %1292 = vmatmul.msk.f32.vlgmr.msrb.gmra.mxu1 %vm31_vm12, %v418_v23 }
 0x492   :  { %1037 = vmatpush.msrb.mxu1 %v1524_v1 }
 0x494   :  { %1038 = vmatpush.msrb.mxu1 %v1536_v3 }
 0x496   :  { %1039 = vmatpush.msrb.mxu1 %v1546_v5 }
 0x498   :  { %1040 = vmatpush.msrb.mxu1 %v1560_v7 }
 0x506   :  { %v358_v24 = vpop.f32.mrf.mxu0 }
 0x507   :  { %v361_v25 = vadd.f32 %v1287_v10, %v358_v24 }
 0x509   :  { %1375 = vtanh.f32 %v361_v25  ;;  %v1289_v31 = vmul.f32 -1.442695, %v361_v25  ;;  %v480_v25 = vsel %vm479_vm5, 1, %v1473_v21  ;;  %vm559_vm5 = vcmp.gt.s32.totalorder %v1608_v22, 3 }
 0x50e   :  { %v438_v27 = vpop.f32.mrf.mxu1 }
 0x50f   :  { %v1376_v28 = vpop.eup %1375  ;;  %v441_v29 = vadd.f32 %v1291_v26, %v438_v27 }
 0x510   :  { %384 = vrot.lane.b32.xlu0 %v1376_v28, %s1472_s19 }
 0x511   :  { %1377 = vtanh.f32 %v441_v29  ;;  %v1293_v32 = vmul.f32 -1.442695, %v441_v29 }
 0x512   :  { %1379 = vpow2.f32 %v1289_v31 }
 0x513   :  { %1381 = vpow2.f32 %v1293_v32 }
 0x517   :  { %v1378_v30 = vpop.eup %1377 }
 0x518   :  { %464 = vrot.lane.b32.xlu1 %v1378_v30, %s1472_s19  ;;  %v1380_v33 = vpop.eup %1379 }
 0x519   :  { %v365_v34 = vadd.f32 1.0, %v1380_v33  ;;  %v1382_v35 = vpop.eup %1381 }
 0x51a   :  { %v445_v36 = vadd.f32 1.0, %v1382_v35 }
 0x51b   :  { %1383 = vrcp.f32 %v365_v34  ;;  %v377_v45 = vand.u32 2147483648, %v365_v34  ;;  %vm371_vm13 = vweird.f32 %v365_v34  ;;  %v375_v46 = vand.u32 2147483647, %v365_v34 }
 0x51c   :  { %1385 = vrcp.f32 %v445_v36  ;;  %v457_v56 = vand.u32 2147483648, %v445_v36  ;;  %vm451_vm1 = vweird.f32 %v445_v36  ;;  %v455_v58 = vand.u32 2147483647, %v445_v36 }
 0x51d   :  { %v378_v49 = vor.u32 1.1754944e-38, %v377_v45  ;;  %vm376_vm15 = vcmp.eq.f32.partialorder %v375_v46, 8.507059e+37 }
 0x51e   :  { %v458_v8 = vor.u32 1.1754944e-38, %v457_v56  ;;  %vm456_vm3 = vcmp.eq.f32.partialorder %v455_v58, 8.507059e+37 }
 0x521   :  { %v1384_v37 = vpop.eup %1383 }
 0x522   :  { %v367_v38 = vmul.f32 %v1384_v37, %v365_v34  ;;  %v1386_v40 = vpop.eup %1385  ;;  %vm372_vm9 = vweird.f32 %v1384_v37 }
 0x523   :  { %v447_v42 = vmul.f32 %v1386_v40, %v445_v36  ;;  %vm373_vm14 = vmor %vm371_vm13, %vm372_vm9  ;;  %vm452_vm0 = vweird.f32 %v1386_v40 }
 0x524   :  { %v368_v39 = vsub.f32 1.0, %v367_v38  ;;  %vm453_vm2 = vmor %vm451_vm1, %vm452_vm0 }
 0x525   :  { %v448_v44 = vsub.f32 1.0, %v447_v42 }
 0x526   :  { %v369_v41 = vmul.f32 %v1384_v37, %v368_v39 }
 0x527   :  { %v449_v48 = vmul.f32 %v1386_v40, %v448_v44 }
 0x528   :  { %v370_v43 = vadd.f32 %v1384_v37, %v369_v41 }
 0x529   :  { %v450_v54 = vadd.f32 %v1386_v40, %v449_v48 }
 0x52a   :  { %v374_v47 = vsel %vm373_vm14, %v1384_v37, %v370_v43 }
 0x52b   :  { %v379_v50 = vsel %vm376_vm15, %v378_v49, %v374_v47  ;;  %v454_v61 = vsel %vm453_vm2, %v1386_v40, %v450_v54 }
 0x52c   :  { %v459_v11 = vsel %vm456_vm3, %v458_v8, %v454_v61  ;;  %v382_v62 = vmul.f32 %v379_v50, %v1748_v18 }
 0x52d   :  { %v462_v60 = vmul.f32 %v459_v11, %v1761_v55 }
 0x582   :  { %v385_v51 = vpop.permute.xlu0 %384 }
 0x583   :  { %v387_v52 = vmul.f32 %v385_v51, %v379_v50 }
 0x585   :  { %389 = vrot.lane.b32.xlu2 %v387_v52, %s1474_s0 }
 0x58a   :  { %v465_v9 = vpop.permute.xlu1 %464 }
 0x58b   :  { %v467_v13 = vmul.f32 %v465_v9, %v459_v11 }
 0x58d   :  { %469 = vrot.lane.b32.xlu0 %v467_v13, %s1474_s0 }
 0x595   :  { %402 = vperm.xlu0 %1340, %v400_v15  }
 0x5df   :  { %v390_v23 = vpop.permute.xlu2 %389 }
 0x5e0   :  { %v1751_v10 = vadd.f32 %v390_v23, %v382_v62 }
 0x5e2   :  { %1387 = vtanh.f32 %v1751_v10 }
 0x5e8   :  { %v1388_v24 = vpop.eup %1387 }
 0x5e9   :  { %395 = vrot.lane.b32.xlu1 %v1388_v24, %s1472_s19 }
 0x5f1   :  { %482 = vperm.xlu1 %1341, %v480_v25   ;;  %v560_v25 = vsel %vm559_vm5, 1, %v1473_v21 }
 0x5ff   :  { %v470_v26 = vpop.permute.xlu0 %469 }
 0x600   :  { %v1764_v27 = vadd.f32 %v470_v26, %v462_v60 }
 0x602   :  { %1389 = vtanh.f32 %v1764_v27 }
 0x607   :  { %v1768_v29 = vpop.permute.xlu0 %402 }
 0x608   :  { %v1390_v28 = vpop.eup %1389  ;;  %vm404_vm6 = vcmp.eq.s32.totalorder %v1768_v29, 1 }
 0x609   :  { %475 = vrot.lane.b32.xlu2 %v1390_v28, %s1472_s19  ;;  %v1820_v60 = vsel %vm404_vm6, %v1751_v10, %v1748_v18 }
 0x65b   :  { %v396_v30 = vpop.permute.xlu1 %395 }
 0x65c   :  { %v1770_v31 = vmul.f32 %v396_v30, %v379_v50 }
 0x65e   :  { %v1777_v53 = vsel %vm404_vm6, %v1770_v31, %v1705_v57 }
 0x65f   :  { %497 = vrot.lane.b32.xlu2 %v1777_v53, %s1474_s0 }
 0x663   :  { %v1781_v12 = vpop.permute.xlu1 %482  ;;  %v476_v32 = vpop.permute.xlu2 %475 }
 0x664   :  { %vm484_vm9 = vcmp.eq.s32.totalorder %v1781_v12, 1  ;;  %v1784_v33 = vmul.f32 %v476_v32, %v459_v11 }
 0x665   :  { %v1830_v32 = vsel %vm484_vm9, %v1764_v27, %v1761_v55 }
 0x666   :  { %v1790_v34 = vsel %vm484_vm9, %v1784_v33, %v1718_v20 }
 0x667   :  { %577 = vrot.lane.b32.xlu0 %v1790_v34, %s1474_s0 }
 0x6b9   :  { %v498_v57 = vpop.permute.xlu2 %497 }
 0x6ba   :  { %1296 = vmatmul.msk.f32.vlgmr.msrb.gmra.mxu2 %vm31_vm12, %v498_v57 }
 0x6bb   :  { %1110 = vmatpush.msrb.mxu2 %v1519_v0  ;;  %v1295_v0 = vld [vmem:[%s2204_s1 + $0x30] sm:$0xff] }
 0x6bd   :  { %1111 = vmatpush.msrb.mxu2 %v1529_v2 }
 0x6bf   :  { %1112 = vmatpush.msrb.mxu2 %v1541_v4 }
 0x6c1   :  { %1113 = vmatpush.msrb.mxu2 %v1555_v6 }
 0x6d9   :  { %v578_v35 = vpop.permute.xlu0 %577 }
 0x6da   :  { %1300 = vmatmul.msk.f32.vlgmr.msrb.gmra.mxu3 %vm31_vm12, %v578_v35 }
 0x6db   :  { %1183 = vmatpush.msrb.mxu3 %v1524_v1  ;;  %v1299_v1 = vld [vmem:[%s2204_s1 + $0x48] sm:$0xff] }
 0x6dd   :  { %1184 = vmatpush.msrb.mxu3 %v1536_v3 }
 0x6df   :  { %1185 = vmatpush.msrb.mxu3 %v1546_v5 }
 0x6e1   :  { %1186 = vmatpush.msrb.mxu3 %v1560_v7 }
 0x73d   :  { %v518_v2 = vpop.f32.mrf.mxu2 }
 0x73e   :  { %v521_v20 = vadd.f32 %v1295_v0, %v518_v2 }
 0x740   :  { %1391 = vtanh.f32 %v521_v20  ;;  %v1297_v7 = vmul.f32 -1.442695, %v521_v20 }
 0x746   :  { %v1392_v4 = vpop.eup %1391 }
 0x747   :  { %544 = vrot.lane.b32.xlu1 %v1392_v4, %s1472_s19 }
 0x75d   :  { %v598_v6 = vpop.f32.mrf.mxu3 }
 0x75e   :  { %v601_v3 = vadd.f32 %v1299_v1, %v598_v6 }
 0x760   :  { %1393 = vtanh.f32 %v601_v3  ;;  %v1301_v36 = vmul.f32 -1.442695, %v601_v3 }
 0x761   :  { %1395 = vpow2.f32 %v1297_v7 }
 0x762   :  { %1397 = vpow2.f32 %v1301_v36 }
 0x766   :  { %v1394_v5 = vpop.eup %1393 }
 0x767   :  { %624 = vrot.lane.b32.xlu2 %v1394_v5, %s1472_s19  ;;  %v1396_v37 = vpop.eup %1395  ;;  %v1303_v5 = vld [vmem:[%s2204_s1 + $0x40] sm:$0xff] }
 0x768   :  { %v525_v38 = vadd.f32 1.0, %v1396_v37  ;;  %v1398_v39 = vpop.eup %1397 }
 0x769   :  { %v605_v40 = vadd.f32 1.0, %v1398_v39 }
 0x76a   :  { %1399 = vrcp.f32 %v525_v38  ;;  %v537_v49 = vand.u32 2147483648, %v525_v38  ;;  %vm531_vm14 = vweird.f32 %v525_v38  ;;  %v535_v50 = vand.u32 2147483647, %v525_v38 }
 0x76b   :  { %1401 = vrcp.f32 %v605_v40  ;;  %v617_v9 = vand.u32 2147483648, %v605_v40  ;;  %vm611_vm2 = vweird.f32 %v605_v40  ;;  %v615_v11 = vand.u32 2147483647, %v605_v40 }
 0x76c   :  { %v538_v54 = vor.u32 1.1754944e-38, %v537_v49  ;;  %vm536_vm0 = vcmp.eq.f32.partialorder %v535_v50, 8.507059e+37 }
 0x76d   :  { %v618_v15 = vor.u32 1.1754944e-38, %v617_v9  ;;  %vm616_vm4 = vcmp.eq.f32.partialorder %v615_v11, 8.507059e+37 }
 0x770   :  { %v1400_v41 = vpop.eup %1399 }
 0x771   :  { %v527_v42 = vmul.f32 %v1400_v41, %v525_v38  ;;  %v1402_v44 = vpop.eup %1401  ;;  %vm532_vm13 = vweird.f32 %v1400_v41 }
 0x772   :  { %v607_v46 = vmul.f32 %v1402_v44, %v605_v40  ;;  %vm533_vm15 = vmor %vm531_vm14, %vm532_vm13  ;;  %vm612_vm1 = vweird.f32 %v1402_v44  ;;  %vm639_vm13 = vcmp.gt.s32.totalorder %v1608_v22, 4 }
 0x773   :  { %v528_v43 = vsub.f32 1.0, %v527_v42  ;;  %vm613_vm3 = vmor %vm611_vm2, %vm612_vm1  ;;  %v640_v18 = vsel %vm639_vm13, 1, %v1473_v21 }
 0x774   :  { %v608_v48 = vsub.f32 1.0, %v607_v46 }
 0x775   :  { %v529_v45 = vmul.f32 %v1400_v41, %v528_v43 }
 0x776   :  { %v609_v52 = vmul.f32 %v1402_v44, %v608_v48 }
 0x777   :  { %v530_v47 = vadd.f32 %v1400_v41, %v529_v45 }
 0x778   :  { %v610_v8 = vadd.f32 %v1402_v44, %v609_v52 }
 0x779   :  { %v534_v51 = vsel %vm533_vm15, %v1400_v41, %v530_v47 }
 0x77a   :  { %v539_v58 = vsel %vm536_vm0, %v538_v54, %v534_v51  ;;  %v614_v13 = vsel %vm613_vm3, %v1402_v44, %v610_v8 }
 0x77b   :  { %v619_v23 = vsel %vm616_vm4, %v618_v15, %v614_v13  ;;  %v542_v26 = vmul.f32 %v539_v58, %v1820_v60 }
 0x77c   :  { %v622_v57 = vmul.f32 %v619_v23, %v1830_v32 }
 0x7b9   :  { %v545_v56 = vpop.permute.xlu1 %544 }
 0x7ba   :  { %v547_v61 = vmul.f32 %v545_v56, %v539_v58 }
 0x7bc   :  { %549 = vrot.lane.b32.xlu0 %v547_v61, %s1474_s0 }
 0x7c1   :  { %v625_v62 = vpop.permute.xlu2 %624 }
 0x7c2   :  { %v627_v24 = vmul.f32 %v625_v62, %v619_v23 }
 0x7c4   :  { %629 = vrot.lane.b32.xlu1 %v627_v24, %s1474_s0 }
 0x7cc   :  { %562 = vperm.xlu1 %1341, %v560_v25  }
 0x82e   :  { %v550_v28 = vpop.permute.xlu0 %549 }
 0x82f   :  { %v1823_v30 = vadd.f32 %v550_v28, %v542_v26 }
 0x831   :  { %1403 = vtanh.f32 %v1823_v30 }
 0x836   :  { %v630_v35 = vpop.permute.xlu1 %629 }
 0x837   :  { %v1404_v0 = vpop.eup %1403  ;;  %v1833_v2 = vadd.f32 %v630_v35, %v622_v57 }
 0x838   :  { %555 = vrot.lane.b32.xlu2 %v1404_v0, %s1472_s19 }
 0x839   :  { %1405 = vtanh.f32 %v1833_v2 }
 0x83e   :  { %v1840_v55 = vpop.permute.xlu1 %562 }
 0x83f   :  { %v1406_v10 = vpop.eup %1405  ;;  %vm564_vm14 = vcmp.eq.s32.totalorder %v1840_v55, 1 }
 0x840   :  { %635 = vrot.lane.b32.xlu0 %v1406_v10, %s1472_s19  ;;  %642 = vperm.xlu2 %1342, %v640_v18   ;;  %v1882_v18 = vsel %vm564_vm14, %v1823_v30, %v1820_v60 }
 0x892   :  { %v556_v27 = vpop.permute.xlu2 %555 }
 0x893   :  { %v1842_v20 = vmul.f32 %v556_v27, %v539_v58 }
 0x895   :  { %v1849_v4 = vsel %vm564_vm14, %v1842_v20, %v1777_v53 }
 0x896   :  { %656 = vrot.lane.b32.xlu0 %v1849_v4, %s1474_s0 }
 0x89a   :  { %v1853_v21 = vpop.permute.xlu2 %642 }
 0x89b   :  { %vm644_vm15 = vcmp.eq.s32.totalorder %v1853_v21, 1 }
 0x8b2   :  { %v636_v22 = vpop.permute.xlu0 %635 }
 0x8b3   :  { %v1855_v1 = vmul.f32 %v636_v22, %v619_v23 }
 0x8b5   :  { %v1862_v6 = vsel %vm644_vm15, %v1855_v1, %v1790_v34  ;;  %v1307_v34 = vld [vmem:[%s2204_s1 + $0x38] sm:$0xff]  ;;  %v647_v17 = vsel %vm644_vm15, %v1855_v1, 0.0 }
 0x8b6   :  { %729 = vrot.lane.b32.xlu1 %v1862_v6, %s1474_s0 }
 0x908   :  { %v657_v53 = vpop.permute.xlu0 %656 }
 0x909   :  { %1304 = vmatmul.msk.f32.vlgmr.msra.gmra.mxu0 %vm31_vm12, %v657_v53 }
 0x928   :  { %v730_v3 = vpop.permute.xlu1 %729 }
 0x929   :  { %1308 = vmatmul.msk.f32.vlgmr.msra.gmra.mxu1 %vm31_vm12, %v730_v3  ;;  %v1893_v3 = vsel %vm644_vm15, %v1833_v2, %v1830_v32 }
 0x986   :  { %v677_v7 = vpop.f32.mrf.mxu0 }
 0x987   :  { %v680_v36 = vadd.f32 %v1303_v5, %v677_v7 }
 0x989   :  { %1407 = vtanh.f32 %v680_v36  ;;  %v1305_v41 = vmul.f32 -1.442695, %v680_v36 }
 0x98f   :  { %v1408_v37 = vpop.eup %1407 }
 0x990   :  { %703 = vrot.lane.b32.xlu2 %v1408_v37, %s1472_s19 }
 0x9a6   :  { %v750_v38 = vpop.f32.mrf.mxu1 }
 0x9a7   :  { %v753_v39 = vadd.f32 %v1307_v34, %v750_v38 }
 0x9a9   :  { %1409 = vtanh.f32 %v753_v39  ;;  %v1309_v61 = vmul.f32 -1.442695, %v753_v39 }
 0x9aa   :  { %1411 = vpow2.f32 %v1305_v41 }
 0x9af   :  { %v1410_v40 = vpop.eup %1409 }
 0x9b0   :  { %776 = vrot.lane.b32.xlu0 %v1410_v40, %s1472_s19  ;;  %v1412_v42 = vpop.eup %1411  ;;  %v1311_v40 = vld [vmem:[%s2204_s1 + $0x50] sm:$0xff] }
 0x9b1   :  { %v684_v43 = vadd.f32 1.0, %v1412_v42 }
 0x9b3   :  { %1413 = vrcp.f32 %v684_v43  ;;  %v696_v49 = vand.u32 2147483648, %v684_v43  ;;  %vm690_vm1 = vweird.f32 %v684_v43  ;;  %v694_v50 = vand.u32 2147483647, %v684_v43 }
 0x9b4   :  { %1415 = vpow2.f32 %v1309_v61 }
 0x9b5   :  { %v697_v52 = vor.u32 1.1754944e-38, %v696_v49  ;;  %vm695_vm3 = vcmp.eq.f32.partialorder %v694_v50, 8.507059e+37 }
 0x9b9   :  { %v1414_v44 = vpop.eup %1413 }
 0x9ba   :  { %v686_v45 = vmul.f32 %v1414_v44, %v684_v43  ;;  %vm691_vm0 = vweird.f32 %v1414_v44  ;;  %v1416_v8 = vpop.eup %1415 }
 0x9bb   :  { %vm692_vm2 = vmor %vm690_vm1, %vm691_vm0  ;;  %v757_v9 = vadd.f32 1.0, %v1416_v8 }
 0x9bc   :  { %v687_v46 = vsub.f32 1.0, %v686_v45 }
 0x9bd   :  { %1417 = vrcp.f32 %v757_v9  ;;  %v769_v24 = vand.u32 2147483648, %v757_v9  ;;  %vm763_vm5 = vweird.f32 %v757_v9  ;;  %v767_v25 = vand.u32 2147483647, %v757_v9 }
 0x9be   :  { %v688_v47 = vmul.f32 %v1414_v44, %v687_v46 }
 0x9bf   :  { %v770_v28 = vor.u32 1.1754944e-38, %v769_v24  ;;  %vm768_vm0 = vcmp.eq.f32.partialorder %v767_v25, 8.507059e+37 }
 0x9c0   :  { %v689_v48 = vadd.f32 %v1414_v44, %v688_v47 }
 0x9c2   :  { %v693_v51 = vsel %vm692_vm2, %v1414_v44, %v689_v48 }
 0x9c3   :  { %v698_v56 = vsel %vm695_vm3, %v697_v52, %v693_v51  ;;  %v1418_v11 = vpop.eup %1417 }
 0x9c4   :  { %v759_v13 = vmul.f32 %v1418_v11, %v757_v9  ;;  %vm764_vm4 = vweird.f32 %v1418_v11  ;;  %v701_v10 = vmul.f32 %v698_v56, %v1882_v18 }
 0x9c5   :  { %vm765_vm13 = vmor %vm763_vm5, %vm764_vm4 }
 0x9c6   :  { %v760_v15 = vsub.f32 1.0, %v759_v13 }
 0x9c8   :  { %v761_v62 = vmul.f32 %v1418_v11, %v760_v15 }
 0x9ca   :  { %v762_v23 = vadd.f32 %v1418_v11, %v761_v62 }
 0x9cc   :  { %v766_v26 = vsel %vm765_vm13, %v1418_v11, %v762_v23 }
 0x9cd   :  { %v771_v57 = vsel %vm768_vm0, %v770_v28, %v766_v26 }
 0x9ce   :  { %v774_v5 = vmul.f32 %v771_v57, %v1893_v3 }
 0x9ea   :  { %v704_v54 = vpop.permute.xlu2 %703 }
 0x9eb   :  { %v706_v58 = vmul.f32 %v704_v54, %v698_v56 }
 0x9ed   :  { %708 = vrot.lane.b32.xlu1 %v706_v58, %s1474_s0 }
 0xa22   :  { %v777_v35 = vpop.permute.xlu0 %776 }
 0xa23   :  { %v779_v0 = vmul.f32 %v777_v35, %v771_v57 }
 0xa25   :  { %781 = vrot.lane.b32.xlu2 %v779_v0, %s1474_s0 }
 0xa5f   :  { %v709_v27 = vpop.permute.xlu1 %708 }
 0xa60   :  { %v1885_v22 = vadd.f32 %v709_v27, %v701_v10 }
 0xa62   :  { %1419 = vtanh.f32 %v1885_v22 }
 0xa68   :  { %v1420_v53 = vpop.eup %1419 }
 0xa69   :  { %714 = vrot.lane.b32.xlu0 %v1420_v53, %s1472_s19 }
 0xa7f   :  { %v782_v60 = vpop.permute.xlu2 %781 }
 0xa80   :  { %v1896_v30 = vadd.f32 %v782_v60, %v774_v5 }
 0xa82   :  { %1421 = vtanh.f32 %v1896_v30 }
 0xa88   :  { %v1422_v7 = vpop.eup %1421 }
 0xa89   :  { %787 = vrot.lane.b32.xlu1 %v1422_v7, %s1472_s19 }
 0xadb   :  { %v715_v36 = vpop.permute.xlu0 %714 }
 0xadc   :  { %v1900_v37 = vmul.f32 %v715_v36, %v698_v56  ;;  %v1936_v36 = vsel %vm644_vm15, %v1885_v22, %v1882_v18 }
 0xade   :  { %v1906_v34 = vsel %vm644_vm15, %v1900_v37, %v1849_v4 }
 0xadf   :  { %802 = vrot.lane.b32.xlu2 %v1906_v34, %s1474_s0 }
 0xafb   :  { %v788_v32 = vpop.permute.xlu1 %787 }
 0xafc   :  { %v1910_v2 = vmul.f32 %v788_v32, %v771_v57 }
 0xafe   :  { %v1916_v38 = vsel %vm564_vm14, %v1910_v2, %v1862_v6  ;;  %v1315_v6 = vld [vmem:[%s2204_s1 + $0x28] sm:$0xff] }
 0xaff   :  { %875 = vrot.lane.b32.xlu0 %v1916_v38, %s1474_s0 }
 0xb39   :  { %v803_v39 = vpop.permute.xlu2 %802 }
 0xb3a   :  { %1312 = vmatmul.msk.f32.vlgmr.msra.gmra.mxu2 %vm31_vm12, %v803_v39 }
 0xb71   :  { %v876_v4 = vpop.permute.xlu0 %875 }
 0xb72   :  { %1316 = vmatmul.msk.f32.vlgmr.msra.gmra.mxu3 %vm31_vm12, %v876_v4 }
 0xbbd   :  { %v823_v41 = vpop.f32.mrf.mxu2 }
 0xbbe   :  { %v826_v42 = vadd.f32 %v1311_v40, %v823_v41  ;;  %v1947_v41 = vsel %vm564_vm14, %v1896_v30, %v1893_v3 }
 0xbc0   :  { %1423 = vtanh.f32 %v826_v42  ;;  %v1313_v47 = vmul.f32 -1.442695, %v826_v42 }
 0xbc6   :  { %v1424_v43 = vpop.eup %1423 }
 0xbc7   :  { %849 = vrot.lane.b32.xlu1 %v1424_v43, %s1472_s19 }
 0xbf5   :  { %v896_v44 = vpop.f32.mrf.mxu3 }
 0xbf6   :  { %v899_v45 = vadd.f32 %v1315_v6, %v896_v44 }
 0xbf8   :  { %1425 = vtanh.f32 %v899_v45  ;;  %v1317_v54 = vmul.f32 -1.442695, %v899_v45 }
 0xbf9   :  { %1427 = vpow2.f32 %v1313_v47 }
 0xbfe   :  { %v1426_v46 = vpop.eup %1425 }
 0xbff   :  { %922 = vrot.lane.b32.xlu2 %v1426_v46, %s1472_s19  ;;  %v1428_v48 = vpop.eup %1427 }
 0xc00   :  { %v830_v49 = vadd.f32 1.0, %v1428_v48  ;;  %v1319_v48 = vld [vmem:[%s2204_s1 + $0x60] sm:$0xff] }
 0xc02   :  { %1429 = vrcp.f32 %v830_v49  ;;  %v842_v61 = vand.u32 2147483648, %v830_v49  ;;  %vm836_vm2 = vweird.f32 %v830_v49  ;;  %v840_v8 = vand.u32 2147483647, %v830_v49 }
 0xc03   :  { %1431 = vpow2.f32 %v1317_v54 }
 0xc04   :  { %v843_v13 = vor.u32 1.1754944e-38, %v842_v61  ;;  %vm841_vm4 = vcmp.eq.f32.partialorder %v840_v8, 8.507059e+37 }
 0xc08   :  { %v1430_v50 = vpop.eup %1429 }
 0xc09   :  { %v832_v51 = vmul.f32 %v1430_v50, %v830_v49  ;;  %vm837_vm1 = vweird.f32 %v1430_v50  ;;  %v1432_v9 = vpop.eup %1431 }
 0xc0a   :  { %vm838_vm3 = vmor %vm836_vm2, %vm837_vm1  ;;  %v903_v15 = vadd.f32 1.0, %v1432_v9 }
 0xc0b   :  { %v833_v52 = vsub.f32 1.0, %v832_v51 }
 0xc0c   :  { %1433 = vrcp.f32 %v903_v15  ;;  %v915_v0 = vand.u32 2147483648, %v903_v15  ;;  %vm909_vm13 = vweird.f32 %v903_v15  ;;  %v913_v10 = vand.u32 2147483647, %v903_v15 }
 0xc0d   :  { %v834_v56 = vmul.f32 %v1430_v50, %v833_v52 }
 0xc0e   :  { %v916_v53 = vor.u32 1.1754944e-38, %v915_v0  ;;  %vm914_vm1 = vcmp.eq.f32.partialorder %v913_v10, 8.507059e+37 }
 0xc0f   :  { %v835_v58 = vadd.f32 %v1430_v50, %v834_v56 }
 0xc11   :  { %v839_v11 = vsel %vm838_vm3, %v1430_v50, %v835_v58 }
 0xc12   :  { %v844_v23 = vsel %vm841_vm4, %v843_v13, %v839_v11  ;;  %v1434_v25 = vpop.eup %1433 }
 0xc13   :  { %v905_v26 = vmul.f32 %v1434_v25, %v903_v15  ;;  %vm910_vm5 = vweird.f32 %v1434_v25  ;;  %v847_v32 = vmul.f32 %v844_v23, %v1936_v36 }
 0xc14   :  { %vm911_vm0 = vmor %vm909_vm13, %vm910_vm5 }
 0xc15   :  { %v906_v28 = vsub.f32 1.0, %v905_v26 }
 0xc17   :  { %v907_v57 = vmul.f32 %v1434_v25, %v906_v28 }
 0xc19   :  { %v908_v35 = vadd.f32 %v1434_v25, %v907_v57 }
 0xc1b   :  { %v912_v27 = vsel %vm911_vm0, %v1434_v25, %v908_v35 }
 0xc1c   :  { %v917_v60 = vsel %vm914_vm1, %v916_v53, %v912_v27 }
 0xc1d   :  { %v920_v42 = vmul.f32 %v917_v60, %v1947_v41 }
 0xc39   :  { %v850_v62 = vpop.permute.xlu1 %849 }
 0xc3a   :  { %v852_v24 = vmul.f32 %v850_v62, %v844_v23 }
 0xc3c   :  { %854 = vrot.lane.b32.xlu0 %v852_v24, %s1474_s0 }
 0xc59   :  { %v923_v5 = vpop.permute.xlu2 %922 }
 0xc5a   :  { %v925_v7 = vmul.f32 %v923_v5, %v917_v60 }
 0xc5c   :  { %927 = vrot.lane.b32.xlu1 %v925_v7, %s1474_s0 }
 0xcae   :  { %v855_v39 = vpop.permute.xlu0 %854 }
 0xcaf   :  { %v1939_v4 = vadd.f32 %v855_v39, %v847_v32 }
 0xcb1   :  { %1435 = vtanh.f32 %v1939_v4 }
 0xcb7   :  { %v1436_v40 = vpop.eup %1435 }
 0xcb8   :  { %860 = vrot.lane.b32.xlu2 %v1436_v40, %s1472_s19 }
 0xcce   :  { %v928_v18 = vpop.permute.xlu1 %927 }
 0xccf   :  { %v1950_v22 = vadd.f32 %v928_v18, %v920_v42 }
 0xcd1   :  { %1437 = vtanh.f32 %v1950_v22 }
 0xcd7   :  { %v1438_v43 = vpop.eup %1437 }
 0xcd8   :  { %933 = vrot.lane.b32.xlu0 %v1438_v43, %s1472_s19 }
 0xd12   :  { %v861_v6 = vpop.permute.xlu2 %860 }
 0xd13   :  { %v1954_v44 = vmul.f32 %v861_v6, %v844_v23 }
 0xd15   :  { %v1960_v45 = vsel %vm484_vm9, %v1954_v44, %v1906_v34  ;;  %v866_v29 = vsel %vm484_vm9, %v1954_v44, 0.0 }
 0xd16   :  { %948 = vrot.lane.b32.xlu1 %v1960_v45, %s1474_s0 }
 0xd4a   :  { %v934_v3 = vpop.permute.xlu0 %933 }
 0xd4b   :  { %v1964_v30 = vmul.f32 %v934_v3, %v917_v60 }
 0xd4d   :  { %v1970_v46 = vsel %vm404_vm6, %v1964_v30, %v1916_v38  ;;  %v1323_v38 = vld [vmem:[%s2204_s1 + $0x18] sm:$0xff] }
 0xd4e   :  { %1021 = vrot.lane.b32.xlu2 %v1970_v46, %s1474_s0 }
 0xd88   :  { %v949_v47 = vpop.permute.xlu1 %948 }
 0xd89   :  { %1320 = vmatmul.msk.f32.vlgmr.msrb.gmra.mxu0 %vm31_vm12, %v949_v47  ;;  %v1990_v47 = vsel %vm484_vm9, %v1939_v4, %v1936_v36 }
 0xda8   :  { %v1022_v34 = vpop.permute.xlu2 %1021 }
 0xda9   :  { %1324 = vmatmul.msk.f32.vlgmr.msrb.gmra.mxu1 %vm31_vm12, %v1022_v34 }
 0xe06   :  { %v969_v49 = vpop.f32.mrf.mxu0 }
 0xe07   :  { %v972_v50 = vadd.f32 %v1319_v48, %v969_v49 }
 0xe09   :  { %1439 = vtanh.f32 %v972_v50  ;;  %v1321_v58 = vmul.f32 -1.442695, %v972_v50 }
 0xe0f   :  { %v1440_v51 = vpop.eup %1439 }
 0xe10   :  { %995 = vrot.lane.b32.xlu0 %v1440_v51, %s1472_s19  ;;  %v2001_v51 = vsel %vm404_vm6, %v1950_v22, %v1947_v41 }
 0xe26   :  { %v1042_v52 = vpop.f32.mrf.mxu1 }
 0xe27   :  { %v1045_v54 = vadd.f32 %v1323_v38, %v1042_v52 }
 0xe29   :  { %1441 = vtanh.f32 %v1045_v54  ;;  %v1325_v15 = vmul.f32 -1.442695, %v1045_v54 }
 0xe2a   :  { %1443 = vpow2.f32 %v1321_v58 }
 0xe2f   :  { %v1442_v56 = vpop.eup %1441 }
 0xe30   :  { %1068 = vrot.lane.b32.xlu1 %v1442_v56, %s1472_s19  ;;  %v1444_v61 = vpop.eup %1443 }
 0xe31   :  { %v976_v8 = vadd.f32 1.0, %v1444_v61 }
 0xe33   :  { %1445 = vrcp.f32 %v976_v8  ;;  %v988_v24 = vand.u32 2147483648, %v976_v8  ;;  %vm982_vm3 = vweird.f32 %v976_v8  ;;  %v986_v25 = vand.u32 2147483647, %v976_v8 }
 0xe34   :  { %1447 = vpow2.f32 %v1325_v15 }
 0xe35   :  { %v989_v57 = vor.u32 1.1754944e-38, %v988_v24  ;;  %vm987_vm5 = vcmp.eq.f32.partialorder %v986_v25, 8.507059e+37 }
 0xe39   :  { %v1446_v9 = vpop.eup %1445 }
 0xe3a   :  { %v978_v11 = vmul.f32 %v1446_v9, %v976_v8  ;;  %vm983_vm2 = vweird.f32 %v1446_v9  ;;  %v1448_v26 = vpop.eup %1447 }
 0xe3b   :  { %vm984_vm4 = vmor %vm982_vm3, %vm983_vm2  ;;  %v1049_v35 = vadd.f32 1.0, %v1448_v26 }
 0xe3c   :  { %v979_v13 = vsub.f32 1.0, %v978_v11 }
 0xe3d   :  { %1449 = vrcp.f32 %v1049_v35  ;;  %v1061_v39 = vand.u32 2147483648, %v1049_v35  ;;  %vm1055_vm0 = vweird.f32 %v1049_v35  ;;  %v1059_v40 = vand.u32 2147483647, %v1049_v35 }
 0xe3e   :  { %v980_v62 = vmul.f32 %v1446_v9, %v979_v13 }
 0xe3f   :  { %v1062_v18 = vor.u32 1.1754944e-38, %v1061_v39  ;;  %vm1060_vm2 = vcmp.eq.f32.partialorder %v1059_v40, 8.507059e+37 }
 0xe40   :  { %v981_v23 = vadd.f32 %v1446_v9, %v980_v62 }
 0xe42   :  { %v985_v28 = vsel %vm984_vm4, %v1446_v9, %v981_v23  ;;  %v1327_v9 = vld [vmem:[%s2204_s1 + $0x70] sm:$0xff] }
 0xe43   :  { %v990_v0 = vsel %vm987_vm5, %v989_v57, %v985_v28  ;;  %v1450_v53 = vpop.eup %1449 }
 0xe44   :  { %v1051_v5 = vmul.f32 %v1450_v53, %v1049_v35  ;;  %vm1056_vm13 = vweird.f32 %v1450_v53  ;;  %v993_v34 = vmul.f32 %v990_v0, %v1990_v47 }
 0xe45   :  { %vm1057_vm1 = vmor %vm1055_vm0, %vm1056_vm13 }
 0xe46   :  { %v1052_v60 = vsub.f32 1.0, %v1051_v5 }
 0xe48   :  { %v1053_v7 = vmul.f32 %v1450_v53, %v1052_v60 }
 0xe4a   :  { %v1054_v32 = vadd.f32 %v1450_v53, %v1053_v7 }
 0xe4c   :  { %v1058_v42 = vsel %vm1057_vm1, %v1450_v53, %v1054_v32 }
 0xe4d   :  { %v1063_v6 = vsel %vm1060_vm2, %v1062_v18, %v1058_v42 }
 0xe4e   :  { %v1066_v38 = vmul.f32 %v1063_v6, %v2001_v51 }
 0xe82   :  { %v996_v10 = vpop.permute.xlu0 %995 }
 0xe83   :  { %v998_v27 = vmul.f32 %v996_v10, %v990_v0 }
 0xe85   :  { %1000 = vrot.lane.b32.xlu2 %v998_v27, %s1474_s0 }
 0xea2   :  { %v1069_v43 = vpop.permute.xlu1 %1068 }
 0xea3   :  { %v1071_v3 = vmul.f32 %v1069_v43, %v1063_v6 }
 0xea5   :  { %1073 = vrot.lane.b32.xlu0 %v1071_v3, %s1474_s0 }
 0xedf   :  { %v1001_v48 = vpop.permute.xlu2 %1000 }
 0xee0   :  { %v1993_v49 = vadd.f32 %v1001_v48, %v993_v34 }
 0xee2   :  { %1451 = vtanh.f32 %v1993_v49 }
 0xee8   :  { %v1452_v50 = vpop.eup %1451 }
 0xee9   :  { %1006 = vrot.lane.b32.xlu1 %v1452_v50, %s1472_s19 }
 0xf17   :  { %v1074_v36 = vpop.permute.xlu0 %1073 }
 0xf18   :  { %v2004_v4 = vadd.f32 %v1074_v36, %v1066_v38 }
 0xf1a   :  { %1453 = vtanh.f32 %v2004_v4 }
 0xf20   :  { %v1454_v52 = vpop.eup %1453 }
 0xf21   :  { %1079 = vrot.lane.b32.xlu2 %v1454_v52, %s1472_s19 }
 0xf5b   :  { %v1007_v54 = vpop.permute.xlu1 %1006 }
 0xf5c   :  { %v2008_v56 = vmul.f32 %v1007_v54, %v990_v0 }
 0xf5e   :  { %v2014_v58 = vsel %vm324_vm8, %v2008_v56, %v1960_v45 }
 0xf5f   :  { %1094 = vrot.lane.b32.xlu0 %v2014_v58, %s1474_s0 }
 0xf7b   :  { %v1080_v41 = vpop.permute.xlu2 %1079 }
 0xf7c   :  { %v2018_v22 = vmul.f32 %v1080_v41, %v1063_v6 }
 0xf7e   :  { %v2024_v61 = vsel %vm247_vm7, %v2018_v22, %v1970_v46  ;;  %v1165_v46 = vld [vmem:[%s2204_s1 + $0x8] sm:$0xff] }
 0xf7f   :  { %1167 = vrot.lane.b32.xlu1 %v2024_v61, %s1474_s0 }
 0xfd1   :  { %v1095_v8 = vpop.permute.xlu0 %1094 }
 0xfd2   :  { %1328 = vmatmul.msk.f32.vlgmr.msrb.gmra.mxu2 %vm31_vm12, %v1095_v8 }
 0xff1   :  { %v1168_v45 = vpop.permute.xlu1 %1167 }
 0xff2   :  { %1331 = vmatmul.msk.f32.vlgmr.msrb.gmra.mxu3 %vm31_vm12, %v1168_v45 }
0x1055   :  { %v1115_v11 = vpop.f32.mrf.mxu2 }
0x1056   :  { %v1118_v13 = vadd.f32 %v1327_v9, %v1115_v11  ;;  %v250_v9 = vsel %vm247_vm7, %v1698_v16, 0.0  ;;  %v487_v11 = vsel %vm484_vm9, %v1784_v33, 0.0  ;;  %v2066_v16 = vsel %vm324_vm8, %v1993_v49, %v1990_v47 }
0x1057   :  { %v567_v47 = vsel %vm564_vm14, %v1842_v20, 0.0  ;;  %v1084_v49 = vsel %vm247_vm7, %v2004_v4, %v2001_v51  ;;  %v1012_v51 = vsel %vm324_vm8, %v2008_v56, 0.0 }
0x1058   :  { %1455 = vtanh.f32 %v1118_v13  ;;  %v1329_v25 = vmul.f32 -1.442695, %v1118_v13  ;;  %v720_v13 = vsel %vm644_vm15, %v1900_v37, 0.0 }
0x105e   :  { %v1456_v15 = vpop.eup %1455 }
0x105f   :  { %1141 = vrot.lane.b32.xlu2 %v1456_v15, %s1472_s19  ;;  %v939_v15 = vsel %vm404_vm6, %v1964_v30, 0.0  ;;  %v327_v30 = vsel %vm324_vm8, %v1711_v19, 0.0  ;;  %v793_v19 = vsel %vm564_vm14, %v1910_v2, 0.0  ;;  %v407_v2 = vsel %vm404_vm6, %v1770_v31, 0.0 }
0x1060   :  { %v1085_v31 = vsel %vm247_vm7, %v2018_v22, 0.0 }
0x1075   :  { %v1188_v62 = vpop.f32.mrf.mxu3 }
0x1076   :  { %v1191_v23 = vadd.f32 %v1188_v62, %v1165_v46 }
0x1078   :  { %1457 = vtanh.f32 %v1191_v23  ;;  %v1332_v42 = vmul.f32 -1.442695, %v1191_v23 }
0x1079   :  { %1459 = vpow2.f32 %v1329_v25 }
0x107e   :  { %v1458_v24 = vpop.eup %1457 }
0x107f   :  { %1214 = vrot.lane.b32.xlu0 %v1458_v24, %s1472_s19  ;;  %v1460_v26 = vpop.eup %1459 }
0x1080   :  { %v1122_v28 = vadd.f32 1.0, %v1460_v26 }
0x1082   :  { %1461 = vrcp.f32 %v1122_v28  ;;  %v1134_v53 = vand.u32 2147483648, %v1122_v28  ;;  %vm1128_vm4 = vweird.f32 %v1122_v28  ;;  %v1132_v5 = vand.u32 2147483647, %v1122_v28 }
0x1083   :  { %1463 = vpow2.f32 %v1332_v42 }
0x1084   :  { %v1135_v7 = vor.u32 1.1754944e-38, %v1134_v53  ;;  %vm1133_vm13 = vcmp.eq.f32.partialorder %v1132_v5, 8.507059e+37 }
0x1088   :  { %v1462_v57 = vpop.eup %1461 }
0x1089   :  { %v1124_v35 = vmul.f32 %v1462_v57, %v1122_v28  ;;  %vm1129_vm3 = vweird.f32 %v1462_v57  ;;  %v1464_v18 = vpop.eup %1463 }
0x108a   :  { %vm1130_vm5 = vmor %vm1128_vm4, %vm1129_vm3  ;;  %v1195_v43 = vadd.f32 1.0, %v1464_v18 }
0x108b   :  { %v1125_v0 = vsub.f32 1.0, %v1124_v35 }
0x108c   :  { %1465 = vrcp.f32 %v1195_v43  ;;  %v1207_v38 = vand.u32 2147483648, %v1195_v43  ;;  %vm1201_vm1 = vweird.f32 %v1195_v43  ;;  %v1205_v36 = vand.u32 2147483647, %v1195_v43 }
0x108d   :  { %v1126_v10 = vmul.f32 %v1462_v57, %v1125_v0 }
0x108e   :  { %v1208_v54 = vor.u32 1.1754944e-38, %v1207_v38  ;;  %vm1206_vm3 = vcmp.eq.f32.partialorder %v1205_v36, 8.507059e+37 }
0x108f   :  { %v1127_v27 = vadd.f32 %v1462_v57, %v1126_v10 }
0x1091   :  { %v1131_v60 = vsel %vm1130_vm5, %v1462_v57, %v1127_v27 }
0x1092   :  { %v2038_v39 = vsel %vm1133_vm13, %v1135_v7, %v1131_v60  ;;  %v1466_v6 = vpop.eup %1465 }
0x1093   :  { %v1197_v3 = vmul.f32 %v1466_v6, %v1195_v43  ;;  %vm1202_vm0 = vweird.f32 %v1466_v6  ;;  %v1139_v33 = vmul.f32 %v2038_v39, %v2066_v16 }
0x1094   :  { %vm1203_vm2 = vmor %vm1201_vm1, %vm1202_vm0 }
0x1095   :  { %v1198_v34 = vsub.f32 1.0, %v1197_v3 }
0x1097   :  { %v1199_v48 = vmul.f32 %v1466_v6, %v1198_v34 }
0x1099   :  { %v1200_v50 = vadd.f32 %v1466_v6, %v1199_v48 }
0x109b   :  { %v1204_v52 = vsel %vm1203_vm2, %v1466_v6, %v1200_v50 }
0x109c   :  { %v2042_v41 = vsel %vm1206_vm3, %v1208_v54, %v1204_v52 }
0x109d   :  { %v1212_v23 = vmul.f32 %v2042_v41, %v1084_v49 }
0x10b9   :  { %v1142_v32 = vpop.permute.xlu2 %1141 }
0x10ba   :  { %v1144_v40 = vmul.f32 %v1142_v32, %v2038_v39 }
0x10bc   :  { %1146 = vrot.lane.b32.xlu1 %v1144_v40, %s1474_s0 }
0x10f1   :  { %v1215_v8 = vpop.permute.xlu0 %1214 }
0x10f2   :  { %v1217_v45 = vmul.f32 %v1215_v8, %v2042_v41 }
0x10f4   :  { %1219 = vrot.lane.b32.xlu2 %v1217_v45, %s1474_s0 }
0x10fc   :  { %252 = vrot.lane.b32.xlu2 %v250_v9, %s1474_s0 }
0x1104   :  { %489 = vrot.lane.b32.xlu2 %v487_v11, %s1474_s0 }
0x110c   :  { %722 = vrot.lane.b32.xlu2 %v720_v13, %s1474_s0 }
0x1114   :  { %941 = vrot.lane.b32.xlu2 %v939_v15, %s1474_s0 }
0x112e   :  { %v1147_v46 = vpop.permute.xlu1 %1146 }
0x112f   :  { %v1149_v62 = vadd.f32 %v1147_v46, %v1139_v33 }
0x1131   :  { %1467 = vtanh.f32 %v1149_v62  ;;  %v1157_v5 = vsel %vm171_vm11, %v1149_v62, %v2066_v16 }
0x1137   :  { %v1468_v37 = vpop.eup %1467 }
0x1138   :  { %1152 = vrot.lane.b32.xlu0 %v1468_v37, %s1472_s19 }
0x1140   :  { %329 = vrot.lane.b32.xlu0 %v327_v30, %s1474_s0 }
0x1148   :  { %569 = vrot.lane.b32.xlu0 %v567_v47, %s1474_s0 }
0x114e   :  { %v1220_v24 = vpop.permute.xlu2 %1219 }
0x114f   :  { %v1222_v25 = vadd.f32 %v1220_v24, %v1212_v23 }
0x1150   :  { %795 = vrot.lane.b32.xlu0 %v793_v19, %s1474_s0 }
0x1151   :  { %1469 = vtanh.f32 %v1222_v25  ;;  %v1230_v14 = vsel %vm98_vm10, %v1222_v25, %v1084_v49 }
0x1156   :  { %v253_v26 = vpop.permute.xlu2 %252 }
0x1157   :  { %v1470_v20 = vpop.eup %1469  ;;  %1282 = vst.msk [vmem:[%s2206_s4 + $0x8] sm:$0xff] %vm31_vm12, %v253_v26 }
0x1158   :  { %1014 = vrot.lane.b32.xlu0 %v1012_v51, %s1474_s0  ;;  %1225 = vrot.lane.b32.xlu1 %v1470_v20, %s1472_s19 }
0x115e   :  { %v490_v55 = vpop.permute.xlu2 %489 }
0x115f   :  { %1294 = vst.msk [vmem:[%s2207_s5 + $0x28] sm:$0xff] %vm31_vm12, %v490_v55 }
0x1160   :  { %409 = vrot.lane.b32.xlu1 %v407_v2, %s1474_s0 }
0x1166   :  { %v723_v4 = vpop.permute.xlu2 %722 }
0x1167   :  { %1306 = vst.msk [vmem:[%s2206_s4 + $0x20] sm:$0xff] %vm31_vm12, %v723_v4 }
0x1168   :  { %649 = vrot.lane.b32.xlu1 %v647_v17, %s1474_s0 }
0x116e   :  { %v942_v56 = vpop.permute.xlu2 %941 }
0x116f   :  { %1318 = vst.msk [vmem:[%s2207_s5 + $0x10] sm:$0xff] %vm31_vm12, %v942_v56 }
0x1170   :  { %868 = vrot.lane.b32.xlu1 %v866_v29, %s1474_s0 }
0x1178   :  { %1087 = vrot.lane.b32.xlu1 %v1085_v31, %s1474_s0 }
0x11aa   :  { %v1153_v21 = vpop.permute.xlu0 %1152 }
0x11ab   :  { %v1155_v1 = vmul.f32 %v1153_v21, %v2038_v39 }
0x11ad   :  { %v1158_v28 = vsel %vm171_vm11, %v1155_v1, 0.0  ;;  %v1156_v57 = vsel %vm171_vm11, %v1155_v1, %v2014_v58 }
0x11ae   :  { %1160 = vrot.lane.b32.xlu2 %v1158_v28, %s1474_s0  ;;  %1238 = vrot.lane.b32.xlu1 %v1156_v57, %s1474_s0 }
0x11b2   :  { %v330_v12 = vpop.permute.xlu0 %329 }
0x11b3   :  { %1286 = vst.msk [vmem:[%s2207_s5 + $0x30] sm:$0xff] %vm31_vm12, %v330_v12 }
0x11b6   :  { %1254 = vrot.lane.b32.xlu1 %v1230_v14, %s1475_s15 }
0x11ba   :  { %v570_v44 = vpop.permute.xlu0 %569 }
0x11bb   :  { %1298 = vst.msk [vmem:[%s2206_s4 + $0x18] sm:$0xff] %vm31_vm12, %v570_v44 }
0x11c2   :  { %v796_v58 = vpop.permute.xlu0 %795 }
0x11c3   :  { %1310 = vst.msk [vmem:[%s2207_s5 + $0x18] sm:$0xff] %vm31_vm12, %v796_v58 }
0x11ca   :  { %v1226_v22 = vpop.permute.xlu1 %1225  ;;  %v1015_v35 = vpop.permute.xlu0 %1014 }
0x11cb   :  { %v1228_v0 = vmul.f32 %v1226_v22, %v2042_v41  ;;  %1322 = vst.msk [vmem:[%s2206_s4 + $0x30] sm:$0xff] %vm31_vm12, %v1015_v35 }
0x11cd   :  { %v1231_v10 = vsel %vm98_vm10, %v1228_v0, 0.0  ;;  %v1229_v27 = vsel %vm98_vm10, %v1228_v0, %v2024_v61 }
0x11ce   :  { %1233 = vrot.lane.b32.xlu0 %v1231_v10, %s1474_s0  ;;  %1243 = vrot.lane.b32.xlu2 %v1229_v27, %s1474_s0 }
0x11d2   :  { %v410_v53 = vpop.permute.xlu1 %409 }
0x11d3   :  { %1290 = vst.msk [vmem:[%s2206_s4 + $0x10] sm:$0xff] %vm31_vm12, %v410_v53 }
0x11d6   :  { %1249 = vrot.lane.b32.xlu0 %v1157_v5, %s1475_s15 }
0x11da   :  { %v650_v60 = vpop.permute.xlu1 %649 }
0x11db   :  { %1302 = vst.msk [vmem:[%s2207_s5 + $0x20] sm:$0xff] %vm31_vm12, %v650_v60 }
0x11e2   :  { %v869_v59 = vpop.permute.xlu1 %868 }
0x11e3   :  { %1314 = vst.msk [vmem:[%s2206_s4 + $0x28] sm:$0xff] %vm31_vm12, %v869_v59 }
0x11ea   :  { %v1088_v61 = vpop.permute.xlu1 %1087 }
0x11eb   :  { %1326 = vst.msk [vmem:[%s2207_s5 + $0x8] sm:$0xff] %vm31_vm12, %v1088_v61 }
0x1208   :  { %v1161_v63 = vpop.permute.xlu2 %1160 }
0x1209   :  { %1330 = vst.msk [vmem:[%s2206_s4 + $0x38] sm:$0xff] %vm31_vm12, %v1161_v63 }
0x1220   :  { %v1239_v7 = vpop.permute.xlu1 %1238 }
0x1221   :  { %1241 = vst.msk [vmem:[%s2208_s6] sm:$0xff] %vm31_vm12, %v1239_v7 }
0x1228   :  { %v1244_v32 = vpop.permute.xlu2 %1243  ;;  %v1255_v39 = vpop.permute.xlu1 %1254 }
0x1229   :  { %1333 = vst.msk [vmem:[%s2208_s6 + $0x8] sm:$0xff] %vm31_vm12, %v1244_v32 }
0x122a   :  { %1334 = vst.msk [vmem:[%s2209_s7 + $0x8] sm:$0xff] %vm31_vm12, %v1255_v39 }
0x1240   :  { %v1234_v40 = vpop.permute.xlu0 %1233 }
0x1241   :  { %1236 = vst.msk [vmem:[%s2207_s5] sm:$0xff] %vm31_vm12, %v1234_v40 }
0x1248   :  { %v1250_v42 = vpop.permute.xlu0 %1249 }
0x1249   :  { %1252 = vst.msk [vmem:[%s2209_s7] sm:$0xff] %vm31_vm12, %v1250_v42 }

</bundles_post_ra>
